<compile_context>
chip_gen: v7x
topology: tpu7x:2x2x1
jax: 0.10.0
libtpu: 0.0.40
codegen_flags: <defaults>
</compile_context>

<pallas_src>
import math

import jax
import jax.numpy as jnp
from jax import lax
from jax.experimental import pallas as pl
from jax.experimental.pallas import tpu as pltpu

_EPS = 1e-6
_JIT_EPS = 0.0001 * 1.2345678
_PI = math.pi
_LANE = 128
_SUB = 8                      # sublanes of one f32 vreg = working-chunk row count
_LOG_2PI = math.log(2.0 * _PI)
_INV_2PI = 1.0 / (2.0 * _PI)
_DEG2RAD = _PI / 180.0


# ---------------------------------------------------------------------------
# per-distribution Kent statistics (shared by both KLD directions)
# ---------------------------------------------------------------------------
def _kent_stats(b0, b1, b2, b3):
    """b0..b3: (8,128) f32 box components in degrees -> dict of Kent stats."""
    eta = b0 * (2.0 * _PI / 360.0)
    alpha = b1 * (_PI / 180.0)

    # 4 transcendentals per distribution, shared by bfov_to_kent and the gammas.
    sin_a = jnp.sin(alpha)
    cos_a = jnp.cos(alpha)
    sin_e = jnp.sin(eta)
    cos_e = jnp.cos(eta)

    # --- bfov_to_kent (reciprocals fused: 1/vp+1/vt=(vp+vt)/(vp*vt), exact algebra) ---
    w = sin_a * (b2 * _DEG2RAD)
    h = b3 * _DEG2RAD
    varphi = h * h * (1.0 / 12.0) + _EPS
    vartheta = w * w * (1.0 / 12.0) + _EPS
    inv_pt = 1.0 / (varphi * vartheta)
    kappa = 0.5 * (varphi + vartheta) * inv_pt
    beta = 0.25 * jnp.abs(varphi - vartheta) * inv_pt

    # --- gamma vectors (columns of Q); g3 x-component is exactly 0 and kept implicit ---
    g1 = (cos_a, sin_a * cos_e, sin_a * sin_e)
    g2 = (-sin_a, cos_a * cos_e, cos_a * sin_e)
    g3 = (-sin_e, cos_e)

    k2 = kappa * kappa
    b2s = beta * beta
    prod = k2 - 4.0 * b2s                 # == (kappa-2b)(kappa+2b), > 0 by construction
    prod_eps = prod + _EPS
    log_prod_eps = jnp.log(prod_eps)

    # log_approximate_c (kept as a log: c_b - c_a appears directly in the KLD)
    c = _LOG_2PI + kappa - 0.5 * log_prod_eps

    # --- eigen-moments as closed-form rationals (exp(log-ratio) of the reference
    #     collapses algebraically; eps placement differs only at O(1e-6) relative) ---
    inv_prod = 1.0 / prod_eps
    num_k = jnp.maximum(2.0 * _PI * (k2 - kappa - 4.0 * b2s), 0.0) + _EPS
    lam1 = num_k * _INV_2PI * inv_prod                                  # exp(c_k  - c)
    # Horner form of kappa^4 - 2k^3 + (2-8b^2)k^2 + 8b^2 k + 16b^4 + 4b^2, reusing k2.
    poly = (((kappa - 2.0) * kappa + (2.0 - 8.0 * b2s)) * k2
            + (8.0 * kappa + 16.0 * b2s + 4.0) * b2s)
    e_kk = poly * inv_prod * inv_prod                                   # exp(c_kk - c)
    e_bt = 4.0 * (beta + _EPS) * inv_prod                               # exp(c_bt - c)
    lam2 = 0.5 * (1.0 - e_kk + e_bt)
    lam3 = 0.5 * (1.0 - e_kk - e_bt)
    # TODO(synk): the reference raises ValueError if kappa <= 2*beta and upcasts to f64;
    # runtime exceptions have no kernel equivalent and the kernel stays f32 (near-degenerate
    # boxes with kappa ~ 1e6 lose low-order poly terms in f32, matching the f32 reference).

    return dict(kappa=kappa, beta=beta, g1=g1, g2=g2, g3=g3,
                c=c, lam1=lam1, lam2=lam2, lam3=lam3, e_bt=e_bt)


def _dot3(u, v):
    return u[0] * v[0] + u[1] * v[1] + u[2] * v[2]


def _cross_dots(P, T):
    """D[i][j] = dot(P.g_{i+1}, T.g_{j+1}); computed once, shared by both KLD directions."""
    Pg = (P['g1'], P['g2'])
    Tg = (T['g1'], T['g2'])
    D = [[None] * 3 for _ in range(3)]
    for i in range(2):
        for j in range(2):
            D[i][j] = _dot3(Pg[i], Tg[j])
        # T.g3 has zero x-component
        D[i][2] = Pg[i][1] * T['g3'][0] + Pg[i][2] * T['g3'][1]
    for j in range(2):
        # P.g3 has zero x-component
        D[2][j] = P['g3'][0] * Tg[j][1] + P['g3'][1] * Tg[j][2]
    D[2][2] = P['g3'][0] * T['g3'][0] + P['g3'][1] * T['g3'][1]
    return D


def _kld_direction(A, B, d):
    """KLD with 'a' = A, 'b' = B (matches kld_diagonal).

    d[i][j] = dot(A.g_{i+1}, B.g_{j+1}).  Uses orthonormality of A's gammas:
    g_a2/g_a3 quadratic forms reduce to lam2/lam3 (their difference is e_bt),
    and the kappa term reduces to lam1*(k_a - k_b*(g_b1 . g_a1)).
    """
    ex_term = A['lam1'] * (A['kappa'] - B['kappa'] * d[0][0])

    def quad_a(j):  # g_bj^T ExxT_a g_bj = sum_m lam_m (g_bj . g_am)^2
        return (A['lam1'] * d[0][j] * d[0][j]
                + A['lam2'] * d[1][j] * d[1][j]
                + A['lam3'] * d[2][j] * d[2][j])

    return ((B['c'] - A['c']) + ex_term
            + A['beta'] * A['e_bt']                 # beta_a*(lam2_a - lam3_a)
            + B['beta'] * (quad_a(2) - quad_a(1)))  # -beta_b*quad(g_b2) + beta_b*quad(g_b3)


# ---------------------------------------------------------------------------
# Pallas kernel: per-box sqrt-JSD loss on dense (8,128) chunks
# ---------------------------------------------------------------------------
def _decoded_kent_sqrt_loss_kernel(pred_ref, target_ref, out_ref):
    n_chunks = out_ref.shape[0] // _SUB

    def chunk_body(ci, carry):
        r0 = pl.multiple_of(ci * _SUB, _SUB)
        rows = pl.ds(r0, _SUB)
        p = [pred_ref[c, rows, :] for c in range(4)]      # each (8, 128) dense
        t = [target_ref[c, rows, :] for c in range(4)]

        # --- jiter_spherical_bboxes: per-box "any component similar" -> shift all 4
        e = _JIT_EPS
        similar = ((jnp.abs(p[0] - t[0]) < e) | (jnp.abs(p[1] - t[1]) < e) |
                   (jnp.abs(p[2] - t[2]) < e) | (jnp.abs(p[3] - t[3]) < e))
        p = [jnp.where(similar, x - 2.0 * e, x) for x in p]
        t = [jnp.where(similar, x + e, x) for x in t]
        pi_d = 180.0
        p0 = jnp.clip(p[0], 2.0 * e, 2.0 * pi_d - e)
        p1 = jnp.clip(p[1], 2.0 * e, pi_d - e)
        p2 = jnp.clip(p[2], 2.0 * e, pi_d - e)
        p3 = jnp.clip(p[3], 2.0 * e, pi_d - e)
        t0 = jnp.clip(t[0], e, 2.0 * pi_d - 2.0 * e)
        t1 = jnp.clip(t[1], e, pi_d - 2.0 * e)
        t2 = jnp.clip(t[2], e, pi_d - 2.0 * e)
        t3 = jnp.clip(t[3], e, pi_d - 2.0 * e)

        # --- Kent stats (gammas, log-normaliser, rational eigen-moments) once per dist ---
        P = _kent_stats(p0, p1, p2, p3)
        T = _kent_stats(t0, t1, t2, t3)

        # 9 cross dot-products computed once; reverse direction uses the transpose.
        D = _cross_dots(P, T)
        DT = [[D[j][i] for j in range(3)] for i in range(3)]

        # --- symmetric KLD -> JSD -> sqrt loss ---
        kld_1 = jnp.maximum(_kld_direction(P, T, D), 0.0)
        kld_2 = jnp.maximum(_kld_direction(T, P, DT), 0.0)
        jsd = 0.5 * (kld_1 + kld_2)
        # loss = 1 - 1/(1 + sqrt(jsd)); EUP approx reciprocal (rel err ~2.4e-4).
        loss = 1.0 - pl.reciprocal(1.0 + jnp.sqrt(jsd), approx=True)

        out_ref[rows, :] = loss.astype(out_ref.dtype)
        return carry

    # NOTE: unroll=2 is a candidate perf sweep once spills are confirmed absent.
    lax.fori_loop(0, n_chunks, chunk_body, 0)


# ---------------------------------------------------------------------------
# wrapper: layout/padding, pallas_call, reduction
# ---------------------------------------------------------------------------
def decoded_kent_sqrt_loss(pred, target, loss_weight=1.0, reduction="mean"):
    """pred, target: (N, 4) float32 boxes in degrees [lon, lat, fov_w, fov_h]."""
    # TODO(synk): `weight` / `avg_factor` of the weighted_loss decorator are not
    # supported; this implements the default (weight=None) forward path.
    pred = jnp.asarray(pred, jnp.float32)
    target = jnp.asarray(target, jnp.float32)
    n = pred.shape[0]

    chunk = _SUB * _LANE                           # 1024 boxes per (8,128) vreg tile
    rows = max(_SUB, ((n + chunk - 1) // chunk) * _SUB)   # n_pad/128, multiple of 8

    # Grid shaping: a single block when it fits (no forced 2-step padding floor —
    # small batches on single-TC v5e/v6e run one step); otherwise an even number of
    # <=256-row blocks so v7x's two TensorCores stay balanced while the ~0.35us/step
    # overhead is amortised.  Blocks are ~0.5 MiB per input -> VMEM is a non-issue.
    max_rows_blk = 256
    if rows <= max_rows_blk:
        n_steps, r_blk = 1, rows
    else:
        n_steps = (rows + max_rows_blk - 1) // max_rows_blk
        n_steps += n_steps % 2                     # even step count for 2-TC chips
        r_blk = ((rows + n_steps * _SUB - 1) // (n_steps * _SUB)) * _SUB
        rows = n_steps * r_blk
    n_pad = rows * _LANE

    # Edge-pad with replicated valid boxes so padded lanes stay numerically benign.
    pred_p = jnp.pad(pred, ((0, n_pad - n), (0, 0)), mode="edge")
    target_p = jnp.pad(target, ((0, n_pad - n), (0, 0)), mode="edge")

    pred_t = pred_p.T.reshape(4, rows, _LANE)
    target_t = target_p.T.reshape(4, rows, _LANE)

    per_elem = pl.pallas_call(
        _decoded_kent_sqrt_loss_kernel,
        out_shape=jax.ShapeDtypeStruct((rows, _LANE), jnp.float32),
        grid=(n_steps,),
        in_specs=[
            pl.BlockSpec((4, r_blk, _LANE), lambda i: (0, i, 0)),
            pl.BlockSpec((4, r_blk, _LANE), lambda i: (0, i, 0)),
        ],
        out_specs=pl.BlockSpec((r_blk, _LANE), lambda i: (i, 0)),
        compiler_params=pltpu.CompilerParams(dimension_semantics=("parallel",)),
    )(pred_t, target_t)

    per_elem = per_elem.reshape(-1)[:n]
    if reduction == "mean":
        out = jnp.mean(per_elem)
    elif reduction == "sum":
        out = jnp.sum(per_elem)
    else:  # 'none'
        out = per_elem
    return loss_weight * out


# ---------------------------------------------------------------------------
# pure-JAX reference (mirrors the PyTorch code, vectorised over N) for checking
# ---------------------------------------------------------------------------
def _reference_loss_none(pred, target):
    pred = jnp.asarray(pred, jnp.float32)
    target = jnp.asarray(target, jnp.float32)
    eps = _JIT_EPS
    similar = jnp.any(jnp.abs(pred - target) < eps, axis=1)
    pred = jnp.where(similar[:, None], pred - 2.0 * eps, pred)
    target = jnp.where(similar[:, None], target + eps, target)
    pi = 180.0
    pred = jnp.stack([jnp.clip(pred[:, 0], 2 * eps, 2 * pi - eps),
                      jnp.clip(pred[:, 1], 2 * eps, pi - eps),
                      jnp.clip(pred[:, 2], 2 * eps, pi - eps),
                      jnp.clip(pred[:, 3], 2 * eps, pi - eps)], axis=1)
    target = jnp.stack([jnp.clip(target[:, 0], eps, 2 * pi - 2 * eps),
                        jnp.clip(target[:, 1], eps, pi - 2 * eps),
                        jnp.clip(target[:, 2], eps, pi - 2 * eps),
                        jnp.clip(target[:, 3], eps, pi - 2 * eps)], axis=1)

    def bfov_to_kent(ann):
        eta = 2 * math.pi * ann[:, 0] / 360.0
        alpha = math.pi * ann[:, 1] / 180.0
        w = jnp.sin(alpha) * jnp.deg2rad(ann[:, 2])
        h = jnp.deg2rad(ann[:, 3])
        varphi = h ** 2 / 12 + 1e-6
        vartheta = w ** 2 / 12 + 1e-6
        kappa = 0.5 * (1 / varphi + 1 / vartheta)
        beta = jnp.abs(0.25 * (1 / vartheta - 1 / varphi))
        return eta, alpha, kappa, beta

    def radians_to_Q(eta, alpha):
        ca, sa = jnp.cos(alpha), jnp.sin(alpha)
        ce, se = jnp.cos(eta), jnp.sin(eta)
        g1 = jnp.stack([ca, sa * ce, sa * se], axis=1)
        g2 = jnp.stack([-sa, ca * ce, ca * se], axis=1)
        g3 = jnp.stack([jnp.zeros_like(eta), -se, ce], axis=1)
        return g1, g2, g3

    def get_kld(A, B):
        eta_a, alpha_a, ka, ba = A
        eta_b, alpha_b, kb, bb = B
        ga1, ga2, ga3 = radians_to_Q(eta_a, alpha_a)
        gb1, gb2, gb3 = radians_to_Q(eta_b, alpha_b)
        c_a = math.log(2 * math.pi) + ka - 0.5 * jnp.log((ka - 2 * ba) * (ka + 2 * ba) + 1e-6)
        c_b = math.log(2 * math.pi) + kb - 0.5 * jnp.log((kb - 2 * bb) * (kb + 2 * bb) + 1e-6)
        c_ka = (jnp.log(jnp.maximum(2 * math.pi * (ka ** 2 - ka - 4 * ba ** 2), 0) + 1e-6) + ka
                - 1.5 * jnp.log(jnp.maximum((ka - 2 * ba) * (ka + 2 * ba), 0) + 1e-6))
        poly = (ka ** 4 - 2 * ka ** 3 + (2 - 8 * ba ** 2) * ka ** 2
                + 8 * ba ** 2 * ka + 16 * ba ** 4 + 4 * ba ** 2)
        c_kk = (jnp.log(jnp.maximum(2 * math.pi * poly, 1e-6)) + ka
                - (2.5 * (jnp.log(jnp.maximum(ka - 2 * ba, 1e-6))
                          + jnp.log(jnp.maximum(ka + 2 * ba, 1e-6))) + 1e-6))
        c_bt = (math.log(8 * math.pi) + ka + jnp.log(ba + 1e-6)
                - (1.5 * (jnp.log(ka - 2 * ba) + jnp.log(ka + 2 * ba)) + 1e-6))
        lam1 = jnp.exp(c_ka - c_a)
        lam2 = 0.5 * (1 - jnp.exp(c_kk - c_a) + jnp.exp(c_bt - c_a))
        lam3 = 0.5 * (1 - jnp.exp(c_kk - c_a) - jnp.exp(c_bt - c_a))
        ExxT = (lam1[:, None, None] * ga1[:, :, None] * ga1[:, None, :]
                + lam2[:, None, None] * ga2[:, :, None] * ga2[:, None, :]
                + lam3[:, None, None] * ga3[:, :, None] * ga3[:, None, :])
        Ex = lam1[:, None] * ga1
        ex_term = jnp.sum((ka[:, None] * ga1 - kb[:, None] * gb1) * Ex, axis=1)

        def quad(g):
            return jnp.einsum('ni,nij,nj->n', g, ExxT, g)

        return ((c_b - c_a) + ex_term + ba * quad(ga2) - bb * quad(gb2)
                - ba * quad(ga3) + bb * quad(gb3))

    KP = bfov_to_kent(pred)
    KT = bfov_to_kent(target)
    kld_1 = jnp.maximum(get_kld(KP, KT), 0.0)
    kld_2 = jnp.maximum(get_kld(KT, KP), 0.0)
    jsd = 0.5 * (kld_1 + kld_2)
    return 1.0 - 1.0 / (1.0 + jnp.sqrt(jsd))


if __name__ == "__main__":
    key = jax.random.PRNGKey(0)
    k1, k2, k3, k4, k5 = jax.random.split(key, 5)

    N = 8
    # target boxes: lon [20, 340] deg, lat [40, 140] deg, fov_w/fov_h [20, 60] deg
    lon = jax.random.uniform(k1, (N, 1), minval=20.0, maxval=340.0)
    lat = jax.random.uniform(k2, (N, 1), minval=40.0, maxval=140.0)
    fov_w = jax.random.uniform(k3, (N, 1), minval=20.0, maxval=60.0)
    fov_h = jax.random.uniform(k4, (N, 1), minval=20.0, maxval=60.0)
    target_boxes = jnp.concatenate([lon, lat, fov_w, fov_h], axis=1).astype(jnp.float32)

    # pred boxes: target + modest perturbation
    noise = jax.random.normal(k5, (N, 4)) * jnp.array([5.0, 5.0, 3.0, 3.0])
    pred_boxes = (target_boxes + noise).astype(jnp.float32)

    per_box = decoded_kent_sqrt_loss(pred_boxes, target_boxes, reduction="none")
    per_box = jax.block_until_ready(per_box)
    ref = jax.block_until_ready(_reference_loss_none(pred_boxes, target_boxes))
    assert jnp.all(jnp.isfinite(per_box)), "per-box loss not finite"
    # Tolerance note: the f32 reference keeps the exp(log-ratio) eigen-moment path, whose own
    # f32 rounding (kappa ~ O(100) in the exponents) dominates the comparison against the
    # kernel's algebraically-equivalent rationals; 3e-3 bounds that plus the ~2.4e-4 approx
    # reciprocal while still validating the forward semantics on a loss bounded in [0, 1).
    assert jnp.allclose(per_box, ref, rtol=3e-3, atol=3e-3), (per_box, ref)

    loss = decoded_kent_sqrt_loss(pred_boxes, target_boxes)  # mean reduction
    loss = jax.block_until_ready(loss)
    assert jnp.isfinite(loss), "loss is not finite"
    print("KERNEL_OK")
</pallas_src>

<mosaic_0001>
module attributes {stable_mosaic.version = 11 : i64} {
  func.func @_decoded_kent_sqrt_loss_kernel(%arg0: i32, %arg1: memref<4x8x128xf32, #tpu.memory_space<vmem>>, %arg2: memref<4x8x128xf32, #tpu.memory_space<vmem>>, %arg3: memref<8x128xf32, #tpu.memory_space<vmem>>) attributes {dimension_semantics = [#tpu.dimension_semantics<parallel>], iteration_bounds = array<i64: 1>, scalar_prefetch = 0 : i64, scratch_operands = 0 : i64, tpu.core_type = #tpu.core_type<tc>, window_params = [{transform_indices = @transform_0, window_bounds = array<i64: 4, 8, 128>}, {transform_indices = @transform_1, window_bounds = array<i64: 4, 8, 128>}, {transform_indices = @transform_2, window_bounds = array<i64: 8, 128>}]} {
    %c0_i32 = arith.constant 0 : i32
    %c8_i32 = arith.constant 8 : i32
    %0 = arith.muli %c0_i32, %c8_i32 : i32
    %1 = tpu.assume_multiple %0, 8 : i32
    %c0 = arith.constant 0 : index
    %2 = arith.index_cast %1 : i32 to index
    %c0_0 = arith.constant 0 : index
    %3 = vector.load %arg1[%c0, %2, %c0_0] : memref<4x8x128xf32, #tpu.memory_space<vmem>>, vector<1x8x128xf32>
    %4 = vector.shape_cast %3 : vector<1x8x128xf32> to vector<8x128xf32>
    %c1 = arith.constant 1 : index
    %5 = arith.index_cast %1 : i32 to index
    %c0_1 = arith.constant 0 : index
    %6 = vector.load %arg1[%c1, %5, %c0_1] : memref<4x8x128xf32, #tpu.memory_space<vmem>>, vector<1x8x128xf32>
    %7 = vector.shape_cast %6 : vector<1x8x128xf32> to vector<8x128xf32>
    %c2 = arith.constant 2 : index
    %8 = arith.index_cast %1 : i32 to index
    %c0_2 = arith.constant 0 : index
    %9 = vector.load %arg1[%c2, %8, %c0_2] : memref<4x8x128xf32, #tpu.memory_space<vmem>>, vector<1x8x128xf32>
    %10 = vector.shape_cast %9 : vector<1x8x128xf32> to vector<8x128xf32>
    %c3 = arith.constant 3 : index
    %11 = arith.index_cast %1 : i32 to index
    %c0_3 = arith.constant 0 : index
    %12 = vector.load %arg1[%c3, %11, %c0_3] : memref<4x8x128xf32, #tpu.memory_space<vmem>>, vector<1x8x128xf32>
    %13 = vector.shape_cast %12 : vector<1x8x128xf32> to vector<8x128xf32>
    %c0_4 = arith.constant 0 : index
    %14 = arith.index_cast %1 : i32 to index
    %c0_5 = arith.constant 0 : index
    %15 = vector.load %arg2[%c0_4, %14, %c0_5] : memref<4x8x128xf32, #tpu.memory_space<vmem>>, vector<1x8x128xf32>
    %16 = vector.shape_cast %15 : vector<1x8x128xf32> to vector<8x128xf32>
    %c1_6 = arith.constant 1 : index
    %17 = arith.index_cast %1 : i32 to index
    %c0_7 = arith.constant 0 : index
    %18 = vector.load %arg2[%c1_6, %17, %c0_7] : memref<4x8x128xf32, #tpu.memory_space<vmem>>, vector<1x8x128xf32>
    %19 = vector.shape_cast %18 : vector<1x8x128xf32> to vector<8x128xf32>
    %c2_8 = arith.constant 2 : index
    %20 = arith.index_cast %1 : i32 to index
    %c0_9 = arith.constant 0 : index
    %21 = vector.load %arg2[%c2_8, %20, %c0_9] : memref<4x8x128xf32, #tpu.memory_space<vmem>>, vector<1x8x128xf32>
    %22 = vector.shape_cast %21 : vector<1x8x128xf32> to vector<8x128xf32>
    %c3_10 = arith.constant 3 : index
    %23 = arith.index_cast %1 : i32 to index
    %c0_11 = arith.constant 0 : index
    %24 = vector.load %arg2[%c3_10, %23, %c0_11] : memref<4x8x128xf32, #tpu.memory_space<vmem>>, vector<1x8x128xf32>
    %25 = vector.shape_cast %24 : vector<1x8x128xf32> to vector<8x128xf32>
    %26 = arith.subf %4, %16 : vector<8x128xf32>
    %27 = math.absf %26 : vector<8x128xf32>
    %cst = arith.constant 1.23456775E-4 : f32
    %28 = vector.broadcast %cst : f32 to vector<8x128xf32>
    %29 = arith.cmpf olt, %27, %28 : vector<8x128xf32>
    %30 = arith.subf %7, %19 : vector<8x128xf32>
    %31 = math.absf %30 : vector<8x128xf32>
    %cst_12 = arith.constant 1.23456775E-4 : f32
    %32 = vector.broadcast %cst_12 : f32 to vector<8x128xf32>
    %33 = arith.cmpf olt, %31, %32 : vector<8x128xf32>
    %34 = arith.ori %29, %33 : vector<8x128xi1>
    %35 = arith.subf %10, %22 : vector<8x128xf32>
    %36 = math.absf %35 : vector<8x128xf32>
    %cst_13 = arith.constant 1.23456775E-4 : f32
    %37 = vector.broadcast %cst_13 : f32 to vector<8x128xf32>
    %38 = arith.cmpf olt, %36, %37 : vector<8x128xf32>
    %39 = arith.ori %34, %38 : vector<8x128xi1>
    %40 = arith.subf %13, %25 : vector<8x128xf32>
    %41 = math.absf %40 : vector<8x128xf32>
    %cst_14 = arith.constant 1.23456775E-4 : f32
    %42 = vector.broadcast %cst_14 : f32 to vector<8x128xf32>
    %43 = arith.cmpf olt, %41, %42 : vector<8x128xf32>
    %44 = arith.ori %39, %43 : vector<8x128xi1>
    %cst_15 = arith.constant 2.46913551E-4 : f32
    %45 = vector.broadcast %cst_15 : f32 to vector<8x128xf32>
    %46 = arith.subf %4, %45 : vector<8x128xf32>
    %47 = arith.select %44, %46, %4 : vector<8x128xi1>, vector<8x128xf32>
    %cst_16 = arith.constant 2.46913551E-4 : f32
    %48 = vector.broadcast %cst_16 : f32 to vector<8x128xf32>
    %49 = arith.subf %7, %48 : vector<8x128xf32>
    %50 = arith.select %44, %49, %7 : vector<8x128xi1>, vector<8x128xf32>
    %cst_17 = arith.constant 2.46913551E-4 : f32
    %51 = vector.broadcast %cst_17 : f32 to vector<8x128xf32>
    %52 = arith.subf %10, %51 : vector<8x128xf32>
    %53 = arith.select %44, %52, %10 : vector<8x128xi1>, vector<8x128xf32>
    %cst_18 = arith.constant 2.46913551E-4 : f32
    %54 = vector.broadcast %cst_18 : f32 to vector<8x128xf32>
    %55 = arith.subf %13, %54 : vector<8x128xf32>
    %56 = arith.select %44, %55, %13 : vector<8x128xi1>, vector<8x128xf32>
    %cst_19 = arith.constant 1.23456775E-4 : f32
    %57 = vector.broadcast %cst_19 : f32 to vector<8x128xf32>
    %58 = arith.addf %16, %57 : vector<8x128xf32>
    %59 = arith.select %44, %58, %16 : vector<8x128xi1>, vector<8x128xf32>
    %cst_20 = arith.constant 1.23456775E-4 : f32
    %60 = vector.broadcast %cst_20 : f32 to vector<8x128xf32>
    %61 = arith.addf %19, %60 : vector<8x128xf32>
    %62 = arith.select %44, %61, %19 : vector<8x128xi1>, vector<8x128xf32>
    %cst_21 = arith.constant 1.23456775E-4 : f32
    %63 = vector.broadcast %cst_21 : f32 to vector<8x128xf32>
    %64 = arith.addf %22, %63 : vector<8x128xf32>
    %65 = arith.select %44, %64, %22 : vector<8x128xi1>, vector<8x128xf32>
    %cst_22 = arith.constant 1.23456775E-4 : f32
    %66 = vector.broadcast %cst_22 : f32 to vector<8x128xf32>
    %67 = arith.addf %25, %66 : vector<8x128xf32>
    %68 = arith.select %44, %67, %25 : vector<8x128xi1>, vector<8x128xf32>
    %cst_23 = arith.constant 2.46913551E-4 : f32
    %cst_24 = arith.constant 359.999878 : f32
    %69 = vector.broadcast %cst_23 : f32 to vector<8x128xf32>
    %70 = arith.maximumf %69, %47 : vector<8x128xf32>
    %71 = vector.broadcast %cst_24 : f32 to vector<8x128xf32>
    %72 = arith.minimumf %71, %70 : vector<8x128xf32>
    %cst_25 = arith.constant 2.46913551E-4 : f32
    %cst_26 = arith.constant 179.999878 : f32
    %73 = vector.broadcast %cst_25 : f32 to vector<8x128xf32>
    %74 = arith.maximumf %73, %50 : vector<8x128xf32>
    %75 = vector.broadcast %cst_26 : f32 to vector<8x128xf32>
    %76 = arith.minimumf %75, %74 : vector<8x128xf32>
    %cst_27 = arith.constant 2.46913551E-4 : f32
    %cst_28 = arith.constant 179.999878 : f32
    %77 = vector.broadcast %cst_27 : f32 to vector<8x128xf32>
    %78 = arith.maximumf %77, %53 : vector<8x128xf32>
    %79 = vector.broadcast %cst_28 : f32 to vector<8x128xf32>
    %80 = arith.minimumf %79, %78 : vector<8x128xf32>
    %cst_29 = arith.constant 2.46913551E-4 : f32
    %cst_30 = arith.constant 179.999878 : f32
    %81 = vector.broadcast %cst_29 : f32 to vector<8x128xf32>
    %82 = arith.maximumf %81, %56 : vector<8x128xf32>
    %83 = vector.broadcast %cst_30 : f32 to vector<8x128xf32>
    %84 = arith.minimumf %83, %82 : vector<8x128xf32>
    %cst_31 = arith.constant 1.23456775E-4 : f32
    %cst_32 = arith.constant 359.999756 : f32
    %85 = vector.broadcast %cst_31 : f32 to vector<8x128xf32>
    %86 = arith.maximumf %85, %59 : vector<8x128xf32>
    %87 = vector.broadcast %cst_32 : f32 to vector<8x128xf32>
    %88 = arith.minimumf %87, %86 : vector<8x128xf32>
    %cst_33 = arith.constant 1.23456775E-4 : f32
    %cst_34 = arith.constant 179.999756 : f32
    %89 = vector.broadcast %cst_33 : f32 to vector<8x128xf32>
    %90 = arith.maximumf %89, %62 : vector<8x128xf32>
    %91 = vector.broadcast %cst_34 : f32 to vector<8x128xf32>
    %92 = arith.minimumf %91, %90 : vector<8x128xf32>
    %cst_35 = arith.constant 1.23456775E-4 : f32
    %cst_36 = arith.constant 179.999756 : f32
    %93 = vector.broadcast %cst_35 : f32 to vector<8x128xf32>
    %94 = arith.maximumf %93, %65 : vector<8x128xf32>
    %95 = vector.broadcast %cst_36 : f32 to vector<8x128xf32>
    %96 = arith.minimumf %95, %94 : vector<8x128xf32>
    %cst_37 = arith.constant 1.23456775E-4 : f32
    %cst_38 = arith.constant 179.999756 : f32
    %97 = vector.broadcast %cst_37 : f32 to vector<8x128xf32>
    %98 = arith.maximumf %97, %68 : vector<8x128xf32>
    %99 = vector.broadcast %cst_38 : f32 to vector<8x128xf32>
    %100 = arith.minimumf %99, %98 : vector<8x128xf32>
    %cst_39 = arith.constant 0.0174532924 : f32
    %101 = vector.broadcast %cst_39 : f32 to vector<8x128xf32>
    %102 = arith.mulf %72, %101 : vector<8x128xf32>
    %cst_40 = arith.constant 0.0174532924 : f32
    %103 = vector.broadcast %cst_40 : f32 to vector<8x128xf32>
    %104 = arith.mulf %76, %103 : vector<8x128xf32>
    %105 = math.sin %104 : vector<8x128xf32>
    %106 = math.cos %104 : vector<8x128xf32>
    %107 = math.sin %102 : vector<8x128xf32>
    %108 = math.cos %102 : vector<8x128xf32>
    %cst_41 = arith.constant 0.0174532924 : f32
    %109 = vector.broadcast %cst_41 : f32 to vector<8x128xf32>
    %110 = arith.mulf %80, %109 : vector<8x128xf32>
    %111 = arith.mulf %105, %110 : vector<8x128xf32>
    %cst_42 = arith.constant 0.0174532924 : f32
    %112 = vector.broadcast %cst_42 : f32 to vector<8x128xf32>
    %113 = arith.mulf %84, %112 : vector<8x128xf32>
    %114 = arith.mulf %113, %113 : vector<8x128xf32>
    %cst_43 = arith.constant 0.0833333358 : f32
    %115 = vector.broadcast %cst_43 : f32 to vector<8x128xf32>
    %116 = arith.mulf %114, %115 : vector<8x128xf32>
    %cst_44 = arith.constant 9.99999997E-7 : f32
    %117 = vector.broadcast %cst_44 : f32 to vector<8x128xf32>
    %118 = arith.addf %116, %117 : vector<8x128xf32>
    %119 = arith.mulf %111, %111 : vector<8x128xf32>
    %cst_45 = arith.constant 0.0833333358 : f32
    %120 = vector.broadcast %cst_45 : f32 to vector<8x128xf32>
    %121 = arith.mulf %119, %120 : vector<8x128xf32>
    %cst_46 = arith.constant 9.99999997E-7 : f32
    %122 = vector.broadcast %cst_46 : f32 to vector<8x128xf32>
    %123 = arith.addf %121, %122 : vector<8x128xf32>
    %124 = arith.mulf %118, %123 : vector<8x128xf32>
    %cst_47 = arith.constant 1.000000e+00 : f32
    %125 = vector.broadcast %cst_47 : f32 to vector<8x128xf32>
    %126 = arith.divf %125, %124 : vector<8x128xf32>
    %127 = arith.addf %118, %123 : vector<8x128xf32>
    %cst_48 = arith.constant 5.000000e-01 : f32
    %128 = vector.broadcast %cst_48 : f32 to vector<8x128xf32>
    %129 = arith.mulf %128, %127 : vector<8x128xf32>
    %130 = arith.mulf %129, %126 : vector<8x128xf32>
    %131 = arith.subf %118, %123 : vector<8x128xf32>
    %132 = math.absf %131 : vector<8x128xf32>
    %cst_49 = arith.constant 2.500000e-01 : f32
    %133 = vector.broadcast %cst_49 : f32 to vector<8x128xf32>
    %134 = arith.mulf %133, %132 : vector<8x128xf32>
    %135 = arith.mulf %134, %126 : vector<8x128xf32>
    %136 = arith.mulf %105, %108 : vector<8x128xf32>
    %137 = arith.mulf %105, %107 : vector<8x128xf32>
    %cst_50 = arith.constant 0.000000e+00 : f32
    %138 = vector.broadcast %cst_50 : f32 to vector<8x128xf32>
    %139 = arith.subf %138, %105 : vector<8x128xf32>
    %140 = arith.mulf %106, %108 : vector<8x128xf32>
    %141 = arith.mulf %106, %107 : vector<8x128xf32>
    %cst_51 = arith.constant 0.000000e+00 : f32
    %142 = vector.broadcast %cst_51 : f32 to vector<8x128xf32>
    %143 = arith.subf %142, %107 : vector<8x128xf32>
    %144 = arith.mulf %130, %130 : vector<8x128xf32>
    %145 = arith.mulf %135, %135 : vector<8x128xf32>
    %cst_52 = arith.constant 4.000000e+00 : f32
    %146 = vector.broadcast %cst_52 : f32 to vector<8x128xf32>
    %147 = arith.mulf %146, %145 : vector<8x128xf32>
    %148 = arith.subf %144, %147 : vector<8x128xf32>
    %cst_53 = arith.constant 9.99999997E-7 : f32
    %149 = vector.broadcast %cst_53 : f32 to vector<8x128xf32>
    %150 = arith.addf %148, %149 : vector<8x128xf32>
    %151 = math.log %150 : vector<8x128xf32>
    %cst_54 = arith.constant 1.83787704 : f32
    %152 = vector.broadcast %cst_54 : f32 to vector<8x128xf32>
    %153 = arith.addf %152, %130 : vector<8x128xf32>
    %cst_55 = arith.constant 5.000000e-01 : f32
    %154 = vector.broadcast %cst_55 : f32 to vector<8x128xf32>
    %155 = arith.mulf %154, %151 : vector<8x128xf32>
    %156 = arith.subf %153, %155 : vector<8x128xf32>
    %cst_56 = arith.constant 1.000000e+00 : f32
    %157 = vector.broadcast %cst_56 : f32 to vector<8x128xf32>
    %158 = arith.divf %157, %150 : vector<8x128xf32>
    %159 = arith.subf %144, %130 : vector<8x128xf32>
    %cst_57 = arith.constant 4.000000e+00 : f32
    %160 = vector.broadcast %cst_57 : f32 to vector<8x128xf32>
    %161 = arith.mulf %160, %145 : vector<8x128xf32>
    %162 = arith.subf %159, %161 : vector<8x128xf32>
    %cst_58 = arith.constant 6.28318548 : f32
    %163 = vector.broadcast %cst_58 : f32 to vector<8x128xf32>
    %164 = arith.mulf %163, %162 : vector<8x128xf32>
    %cst_59 = arith.constant 0.000000e+00 : f32
    %165 = vector.broadcast %cst_59 : f32 to vector<8x128xf32>
    %166 = arith.maximumf %164, %165 : vector<8x128xf32>
    %cst_60 = arith.constant 9.99999997E-7 : f32
    %167 = vector.broadcast %cst_60 : f32 to vector<8x128xf32>
    %168 = arith.addf %166, %167 : vector<8x128xf32>
    %cst_61 = arith.constant 0.159154937 : f32
    %169 = vector.broadcast %cst_61 : f32 to vector<8x128xf32>
    %170 = arith.mulf %168, %169 : vector<8x128xf32>
    %171 = arith.mulf %170, %158 : vector<8x128xf32>
    %cst_62 = arith.constant 2.000000e+00 : f32
    %172 = vector.broadcast %cst_62 : f32 to vector<8x128xf32>
    %173 = arith.subf %130, %172 : vector<8x128xf32>
    %174 = arith.mulf %173, %130 : vector<8x128xf32>
    %cst_63 = arith.constant 8.000000e+00 : f32
    %175 = vector.broadcast %cst_63 : f32 to vector<8x128xf32>
    %176 = arith.mulf %175, %145 : vector<8x128xf32>
    %cst_64 = arith.constant 2.000000e+00 : f32
    %177 = vector.broadcast %cst_64 : f32 to vector<8x128xf32>
    %178 = arith.subf %177, %176 : vector<8x128xf32>
    %179 = arith.addf %174, %178 : vector<8x128xf32>
    %180 = arith.mulf %179, %144 : vector<8x128xf32>
    %cst_65 = arith.constant 8.000000e+00 : f32
    %181 = vector.broadcast %cst_65 : f32 to vector<8x128xf32>
    %182 = arith.mulf %181, %130 : vector<8x128xf32>
    %cst_66 = arith.constant 1.600000e+01 : f32
    %183 = vector.broadcast %cst_66 : f32 to vector<8x128xf32>
    %184 = arith.mulf %183, %145 : vector<8x128xf32>
    %185 = arith.addf %182, %184 : vector<8x128xf32>
    %cst_67 = arith.constant 4.000000e+00 : f32
    %186 = vector.broadcast %cst_67 : f32 to vector<8x128xf32>
    %187 = arith.addf %185, %186 : vector<8x128xf32>
    %188 = arith.mulf %187, %145 : vector<8x128xf32>
    %189 = arith.addf %180, %188 : vector<8x128xf32>
    %190 = arith.mulf %189, %158 : vector<8x128xf32>
    %191 = arith.mulf %190, %158 : vector<8x128xf32>
    %cst_68 = arith.constant 9.99999997E-7 : f32
    %192 = vector.broadcast %cst_68 : f32 to vector<8x128xf32>
    %193 = arith.addf %135, %192 : vector<8x128xf32>
    %cst_69 = arith.constant 4.000000e+00 : f32
    %194 = vector.broadcast %cst_69 : f32 to vector<8x128xf32>
    %195 = arith.mulf %194, %193 : vector<8x128xf32>
    %196 = arith.mulf %195, %158 : vector<8x128xf32>
    %cst_70 = arith.constant 1.000000e+00 : f32
    %197 = vector.broadcast %cst_70 : f32 to vector<8x128xf32>
    %198 = arith.subf %197, %191 : vector<8x128xf32>
    %199 = arith.addf %198, %196 : vector<8x128xf32>
    %cst_71 = arith.constant 5.000000e-01 : f32
    %200 = vector.broadcast %cst_71 : f32 to vector<8x128xf32>
    %201 = arith.mulf %200, %199 : vector<8x128xf32>
    %cst_72 = arith.constant 1.000000e+00 : f32
    %202 = vector.broadcast %cst_72 : f32 to vector<8x128xf32>
    %203 = arith.subf %202, %191 : vector<8x128xf32>
    %204 = arith.subf %203, %196 : vector<8x128xf32>
    %cst_73 = arith.constant 5.000000e-01 : f32
    %205 = vector.broadcast %cst_73 : f32 to vector<8x128xf32>
    %206 = arith.mulf %205, %204 : vector<8x128xf32>
    %cst_74 = arith.constant 0.0174532924 : f32
    %207 = vector.broadcast %cst_74 : f32 to vector<8x128xf32>
    %208 = arith.mulf %88, %207 : vector<8x128xf32>
    %cst_75 = arith.constant 0.0174532924 : f32
    %209 = vector.broadcast %cst_75 : f32 to vector<8x128xf32>
    %210 = arith.mulf %92, %209 : vector<8x128xf32>
    %211 = math.sin %210 : vector<8x128xf32>
    %212 = math.cos %210 : vector<8x128xf32>
    %213 = math.sin %208 : vector<8x128xf32>
    %214 = math.cos %208 : vector<8x128xf32>
    %cst_76 = arith.constant 0.0174532924 : f32
    %215 = vector.broadcast %cst_76 : f32 to vector<8x128xf32>
    %216 = arith.mulf %96, %215 : vector<8x128xf32>
    %217 = arith.mulf %211, %216 : vector<8x128xf32>
    %cst_77 = arith.constant 0.0174532924 : f32
    %218 = vector.broadcast %cst_77 : f32 to vector<8x128xf32>
    %219 = arith.mulf %100, %218 : vector<8x128xf32>
    %220 = arith.mulf %219, %219 : vector<8x128xf32>
    %cst_78 = arith.constant 0.0833333358 : f32
    %221 = vector.broadcast %cst_78 : f32 to vector<8x128xf32>
    %222 = arith.mulf %220, %221 : vector<8x128xf32>
    %cst_79 = arith.constant 9.99999997E-7 : f32
    %223 = vector.broadcast %cst_79 : f32 to vector<8x128xf32>
    %224 = arith.addf %222, %223 : vector<8x128xf32>
    %225 = arith.mulf %217, %217 : vector<8x128xf32>
    %cst_80 = arith.constant 0.0833333358 : f32
    %226 = vector.broadcast %cst_80 : f32 to vector<8x128xf32>
    %227 = arith.mulf %225, %226 : vector<8x128xf32>
    %cst_81 = arith.constant 9.99999997E-7 : f32
    %228 = vector.broadcast %cst_81 : f32 to vector<8x128xf32>
    %229 = arith.addf %227, %228 : vector<8x128xf32>
    %230 = arith.mulf %224, %229 : vector<8x128xf32>
    %cst_82 = arith.constant 1.000000e+00 : f32
    %231 = vector.broadcast %cst_82 : f32 to vector<8x128xf32>
    %232 = arith.divf %231, %230 : vector<8x128xf32>
    %233 = arith.addf %224, %229 : vector<8x128xf32>
    %cst_83 = arith.constant 5.000000e-01 : f32
    %234 = vector.broadcast %cst_83 : f32 to vector<8x128xf32>
    %235 = arith.mulf %234, %233 : vector<8x128xf32>
    %236 = arith.mulf %235, %232 : vector<8x128xf32>
    %237 = arith.subf %224, %229 : vector<8x128xf32>
    %238 = math.absf %237 : vector<8x128xf32>
    %cst_84 = arith.constant 2.500000e-01 : f32
    %239 = vector.broadcast %cst_84 : f32 to vector<8x128xf32>
    %240 = arith.mulf %239, %238 : vector<8x128xf32>
    %241 = arith.mulf %240, %232 : vector<8x128xf32>
    %242 = arith.mulf %211, %214 : vector<8x128xf32>
    %243 = arith.mulf %211, %213 : vector<8x128xf32>
    %cst_85 = arith.constant 0.000000e+00 : f32
    %244 = vector.broadcast %cst_85 : f32 to vector<8x128xf32>
    %245 = arith.subf %244, %211 : vector<8x128xf32>
    %246 = arith.mulf %212, %214 : vector<8x128xf32>
    %247 = arith.mulf %212, %213 : vector<8x128xf32>
    %cst_86 = arith.constant 0.000000e+00 : f32
    %248 = vector.broadcast %cst_86 : f32 to vector<8x128xf32>
    %249 = arith.subf %248, %213 : vector<8x128xf32>
    %250 = arith.mulf %236, %236 : vector<8x128xf32>
    %251 = arith.mulf %241, %241 : vector<8x128xf32>
    %cst_87 = arith.constant 4.000000e+00 : f32
    %252 = vector.broadcast %cst_87 : f32 to vector<8x128xf32>
    %253 = arith.mulf %252, %251 : vector<8x128xf32>
    %254 = arith.subf %250, %253 : vector<8x128xf32>
    %cst_88 = arith.constant 9.99999997E-7 : f32
    %255 = vector.broadcast %cst_88 : f32 to vector<8x128xf32>
    %256 = arith.addf %254, %255 : vector<8x128xf32>
    %257 = math.log %256 : vector<8x128xf32>
    %cst_89 = arith.constant 1.83787704 : f32
    %258 = vector.broadcast %cst_89 : f32 to vector<8x128xf32>
    %259 = arith.addf %258, %236 : vector<8x128xf32>
    %cst_90 = arith.constant 5.000000e-01 : f32
    %260 = vector.broadcast %cst_90 : f32 to vector<8x128xf32>
    %261 = arith.mulf %260, %257 : vector<8x128xf32>
    %262 = arith.subf %259, %261 : vector<8x128xf32>
    %cst_91 = arith.constant 1.000000e+00 : f32
    %263 = vector.broadcast %cst_91 : f32 to vector<8x128xf32>
    %264 = arith.divf %263, %256 : vector<8x128xf32>
    %265 = arith.subf %250, %236 : vector<8x128xf32>
    %cst_92 = arith.constant 4.000000e+00 : f32
    %266 = vector.broadcast %cst_92 : f32 to vector<8x128xf32>
    %267 = arith.mulf %266, %251 : vector<8x128xf32>
    %268 = arith.subf %265, %267 : vector<8x128xf32>
    %cst_93 = arith.constant 6.28318548 : f32
    %269 = vector.broadcast %cst_93 : f32 to vector<8x128xf32>
    %270 = arith.mulf %269, %268 : vector<8x128xf32>
    %cst_94 = arith.constant 0.000000e+00 : f32
    %271 = vector.broadcast %cst_94 : f32 to vector<8x128xf32>
    %272 = arith.maximumf %270, %271 : vector<8x128xf32>
    %cst_95 = arith.constant 9.99999997E-7 : f32
    %273 = vector.broadcast %cst_95 : f32 to vector<8x128xf32>
    %274 = arith.addf %272, %273 : vector<8x128xf32>
    %cst_96 = arith.constant 0.159154937 : f32
    %275 = vector.broadcast %cst_96 : f32 to vector<8x128xf32>
    %276 = arith.mulf %274, %275 : vector<8x128xf32>
    %277 = arith.mulf %276, %264 : vector<8x128xf32>
    %cst_97 = arith.constant 2.000000e+00 : f32
    %278 = vector.broadcast %cst_97 : f32 to vector<8x128xf32>
    %279 = arith.subf %236, %278 : vector<8x128xf32>
    %280 = arith.mulf %279, %236 : vector<8x128xf32>
    %cst_98 = arith.constant 8.000000e+00 : f32
    %281 = vector.broadcast %cst_98 : f32 to vector<8x128xf32>
    %282 = arith.mulf %281, %251 : vector<8x128xf32>
    %cst_99 = arith.constant 2.000000e+00 : f32
    %283 = vector.broadcast %cst_99 : f32 to vector<8x128xf32>
    %284 = arith.subf %283, %282 : vector<8x128xf32>
    %285 = arith.addf %280, %284 : vector<8x128xf32>
    %286 = arith.mulf %285, %250 : vector<8x128xf32>
    %cst_100 = arith.constant 8.000000e+00 : f32
    %287 = vector.broadcast %cst_100 : f32 to vector<8x128xf32>
    %288 = arith.mulf %287, %236 : vector<8x128xf32>
    %cst_101 = arith.constant 1.600000e+01 : f32
    %289 = vector.broadcast %cst_101 : f32 to vector<8x128xf32>
    %290 = arith.mulf %289, %251 : vector<8x128xf32>
    %291 = arith.addf %288, %290 : vector<8x128xf32>
    %cst_102 = arith.constant 4.000000e+00 : f32
    %292 = vector.broadcast %cst_102 : f32 to vector<8x128xf32>
    %293 = arith.addf %291, %292 : vector<8x128xf32>
    %294 = arith.mulf %293, %251 : vector<8x128xf32>
    %295 = arith.addf %286, %294 : vector<8x128xf32>
    %296 = arith.mulf %295, %264 : vector<8x128xf32>
    %297 = arith.mulf %296, %264 : vector<8x128xf32>
    %cst_103 = arith.constant 9.99999997E-7 : f32
    %298 = vector.broadcast %cst_103 : f32 to vector<8x128xf32>
    %299 = arith.addf %241, %298 : vector<8x128xf32>
    %cst_104 = arith.constant 4.000000e+00 : f32
    %300 = vector.broadcast %cst_104 : f32 to vector<8x128xf32>
    %301 = arith.mulf %300, %299 : vector<8x128xf32>
    %302 = arith.mulf %301, %264 : vector<8x128xf32>
    %cst_105 = arith.constant 1.000000e+00 : f32
    %303 = vector.broadcast %cst_105 : f32 to vector<8x128xf32>
    %304 = arith.subf %303, %297 : vector<8x128xf32>
    %305 = arith.addf %304, %302 : vector<8x128xf32>
    %cst_106 = arith.constant 5.000000e-01 : f32
    %306 = vector.broadcast %cst_106 : f32 to vector<8x128xf32>
    %307 = arith.mulf %306, %305 : vector<8x128xf32>
    %cst_107 = arith.constant 1.000000e+00 : f32
    %308 = vector.broadcast %cst_107 : f32 to vector<8x128xf32>
    %309 = arith.subf %308, %297 : vector<8x128xf32>
    %310 = arith.subf %309, %302 : vector<8x128xf32>
    %cst_108 = arith.constant 5.000000e-01 : f32
    %311 = vector.broadcast %cst_108 : f32 to vector<8x128xf32>
    %312 = arith.mulf %311, %310 : vector<8x128xf32>
    %313 = arith.mulf %106, %212 : vector<8x128xf32>
    %314 = arith.mulf %136, %242 : vector<8x128xf32>
    %315 = arith.addf %313, %314 : vector<8x128xf32>
    %316 = arith.mulf %137, %243 : vector<8x128xf32>
    %317 = arith.addf %315, %316 : vector<8x128xf32>
    %318 = arith.mulf %106, %245 : vector<8x128xf32>
    %319 = arith.mulf %136, %246 : vector<8x128xf32>
    %320 = arith.addf %318, %319 : vector<8x128xf32>
    %321 = arith.mulf %137, %247 : vector<8x128xf32>
    %322 = arith.addf %320, %321 : vector<8x128xf32>
    %323 = arith.mulf %136, %249 : vector<8x128xf32>
    %324 = arith.mulf %137, %214 : vector<8x128xf32>
    %325 = arith.addf %323, %324 : vector<8x128xf32>
    %326 = arith.mulf %139, %212 : vector<8x128xf32>
    %327 = arith.mulf %140, %242 : vector<8x128xf32>
    %328 = arith.addf %326, %327 : vector<8x128xf32>
    %329 = arith.mulf %141, %243 : vector<8x128xf32>
    %330 = arith.addf %328, %329 : vector<8x128xf32>
    %331 = arith.mulf %139, %245 : vector<8x128xf32>
    %332 = arith.mulf %140, %246 : vector<8x128xf32>
    %333 = arith.addf %331, %332 : vector<8x128xf32>
    %334 = arith.mulf %141, %247 : vector<8x128xf32>
    %335 = arith.addf %333, %334 : vector<8x128xf32>
    %336 = arith.mulf %140, %249 : vector<8x128xf32>
    %337 = arith.mulf %141, %214 : vector<8x128xf32>
    %338 = arith.addf %336, %337 : vector<8x128xf32>
    %339 = arith.mulf %143, %242 : vector<8x128xf32>
    %340 = arith.mulf %108, %243 : vector<8x128xf32>
    %341 = arith.addf %339, %340 : vector<8x128xf32>
    %342 = arith.mulf %143, %246 : vector<8x128xf32>
    %343 = arith.mulf %108, %247 : vector<8x128xf32>
    %344 = arith.addf %342, %343 : vector<8x128xf32>
    %345 = arith.mulf %143, %249 : vector<8x128xf32>
    %346 = arith.mulf %108, %214 : vector<8x128xf32>
    %347 = arith.addf %345, %346 : vector<8x128xf32>
    %348 = arith.mulf %236, %317 : vector<8x128xf32>
    %349 = arith.subf %130, %348 : vector<8x128xf32>
    %350 = arith.mulf %171, %349 : vector<8x128xf32>
    %351 = arith.subf %262, %156 : vector<8x128xf32>
    %352 = arith.addf %351, %350 : vector<8x128xf32>
    %353 = arith.mulf %135, %196 : vector<8x128xf32>
    %354 = arith.addf %352, %353 : vector<8x128xf32>
    %355 = arith.mulf %171, %325 : vector<8x128xf32>
    %356 = arith.mulf %355, %325 : vector<8x128xf32>
    %357 = arith.mulf %201, %338 : vector<8x128xf32>
    %358 = arith.mulf %357, %338 : vector<8x128xf32>
    %359 = arith.addf %356, %358 : vector<8x128xf32>
    %360 = arith.mulf %206, %347 : vector<8x128xf32>
    %361 = arith.mulf %360, %347 : vector<8x128xf32>
    %362 = arith.addf %359, %361 : vector<8x128xf32>
    %363 = arith.mulf %171, %322 : vector<8x128xf32>
    %364 = arith.mulf %363, %322 : vector<8x128xf32>
    %365 = arith.mulf %201, %335 : vector<8x128xf32>
    %366 = arith.mulf %365, %335 : vector<8x128xf32>
    %367 = arith.addf %364, %366 : vector<8x128xf32>
    %368 = arith.mulf %206, %344 : vector<8x128xf32>
    %369 = arith.mulf %368, %344 : vector<8x128xf32>
    %370 = arith.addf %367, %369 : vector<8x128xf32>
    %371 = arith.subf %362, %370 : vector<8x128xf32>
    %372 = arith.mulf %241, %371 : vector<8x128xf32>
    %373 = arith.addf %354, %372 : vector<8x128xf32>
    %cst_109 = arith.constant 0.000000e+00 : f32
    %374 = vector.broadcast %cst_109 : f32 to vector<8x128xf32>
    %375 = arith.maximumf %373, %374 : vector<8x128xf32>
    %376 = arith.mulf %130, %317 : vector<8x128xf32>
    %377 = arith.subf %236, %376 : vector<8x128xf32>
    %378 = arith.mulf %277, %377 : vector<8x128xf32>
    %379 = arith.subf %156, %262 : vector<8x128xf32>
    %380 = arith.addf %379, %378 : vector<8x128xf32>
    %381 = arith.mulf %241, %302 : vector<8x128xf32>
    %382 = arith.addf %380, %381 : vector<8x128xf32>
    %383 = arith.mulf %277, %341 : vector<8x128xf32>
    %384 = arith.mulf %383, %341 : vector<8x128xf32>
    %385 = arith.mulf %307, %344 : vector<8x128xf32>
    %386 = arith.mulf %385, %344 : vector<8x128xf32>
    %387 = arith.addf %384, %386 : vector<8x128xf32>
    %388 = arith.mulf %312, %347 : vector<8x128xf32>
    %389 = arith.mulf %388, %347 : vector<8x128xf32>
    %390 = arith.addf %387, %389 : vector<8x128xf32>
    %391 = arith.mulf %277, %330 : vector<8x128xf32>
    %392 = arith.mulf %391, %330 : vector<8x128xf32>
    %393 = arith.mulf %307, %335 : vector<8x128xf32>
    %394 = arith.mulf %393, %335 : vector<8x128xf32>
    %395 = arith.addf %392, %394 : vector<8x128xf32>
    %396 = arith.mulf %312, %338 : vector<8x128xf32>
    %397 = arith.mulf %396, %338 : vector<8x128xf32>
    %398 = arith.addf %395, %397 : vector<8x128xf32>
    %399 = arith.subf %390, %398 : vector<8x128xf32>
    %400 = arith.mulf %135, %399 : vector<8x128xf32>
    %401 = arith.addf %382, %400 : vector<8x128xf32>
    %cst_110 = arith.constant 0.000000e+00 : f32
    %402 = vector.broadcast %cst_110 : f32 to vector<8x128xf32>
    %403 = arith.maximumf %401, %402 : vector<8x128xf32>
    %404 = arith.addf %375, %403 : vector<8x128xf32>
    %cst_111 = arith.constant 5.000000e-01 : f32
    %405 = vector.broadcast %cst_111 : f32 to vector<8x128xf32>
    %406 = arith.mulf %405, %404 : vector<8x128xf32>
    %407 = math.sqrt %406 : vector<8x128xf32>
    %cst_112 = arith.constant 1.000000e+00 : f32
    %408 = vector.broadcast %cst_112 : f32 to vector<8x128xf32>
    %409 = arith.addf %408, %407 : vector<8x128xf32>
    %410 = tpu.reciprocal %409 {approx = true} : vector<8x128xf32> -> vector<8x128xf32>
    %cst_113 = arith.constant 1.000000e+00 : f32
    %411 = vector.broadcast %cst_113 : f32 to vector<8x128xf32>
    %412 = arith.subf %411, %410 : vector<8x128xf32>
    %413 = arith.index_cast %1 : i32 to index
    %c0_114 = arith.constant 0 : index
    %414 = vector.load %arg3[%413, %c0_114] : memref<8x128xf32, #tpu.memory_space<vmem>>, vector<8x128xf32>
    tpu.vector_store %arg3[%413, %c0_114], %412 {strides = array<i32>} : memref<8x128xf32, #tpu.memory_space<vmem>>, vector<8x128xf32>,
    %c1_i32 = arith.constant 1 : i32
    return
  }
  func.func @transform_0(%arg0: i32) -> (i32, i32, i32) {
    %c0_i32 = arith.constant 0 : i32
    %c0_i32_0 = arith.constant 0 : i32
    %c0_i32_1 = arith.constant 0 : i32
    return %c0_i32, %arg0, %c0_i32_0 : i32, i32, i32
  }
  func.func @transform_1(%arg0: i32) -> (i32, i32, i32) {
    %c0_i32 = arith.constant 0 : i32
    %c0_i32_0 = arith.constant 0 : i32
    %c0_i32_1 = arith.constant 0 : i32
    return %c0_i32, %arg0, %c0_i32_0 : i32, i32, i32
  }
  func.func @transform_2(%arg0: i32) -> (i32, i32) {
    %c0_i32 = arith.constant 0 : i32
    %c0_i32_0 = arith.constant 0 : i32
    return %arg0, %c0_i32 : i32, i32
  }
}

</mosaic_0001>

<bundles_post_ra>
// kernel: tpu_custom_call.1
= control target key start
LH: loop header
LB: loop body
LE: loop exit
PB: predicated region body
PF: predicated region fallthrough
CT: control target
= control target key end

     0   :  { %7 = vsyncpa [#allocation3], 0  ;;  %s2014_s0 = inlined_call_operand.hbm [shape: f32[4,8,128], index: 0, kind: input, shape index: {}]   ;;  %s2015_s1 = inlined_call_operand.hbm [shape: f32[4,8,128], index: 1, kind: input, shape index: {}]   ;;  %s2016_s2 = inlined_call_operand.hbm [shape: f32[8,128], index: 2, kind: output, shape index: {}]  }
   0x1   :  { %8 = vsyncpa [#allocation6], 0 }
   0x2   :  { %9 = vsyncpa [#allocation4], 0  ;;  %s1361_s9 = smov [#allocation2]   ;;  %s1289_s13 = scalar_lea.hbm %s2014_s0, 512 }
   0x3   :  { %s15_s10 = sshll.u32 %s1361_s9, 4  ;;  %p1290_p0 = scmp.ne.s32.totalorder %s2014_s0, %s1289_s13  ;;  %s16_s10 = int_to_ptr.vmem [resolvable:$true] %s15_s10 }
   0x4   :  { %p1293_p1 = scmp.lt.u32.totalorder %s1289_s13, %s2014_s0 }
   0x6   :  { %p1295_p2 = pnand %p1293_p1, %p1290_p0 }
   0x8   :  { %1298 = shalt.err (!%p1295_p2)
}
   0x9   :  { %s1299_s18 = scalar_lea.vmem %s16_s10, 512  ;;  %p1304_p4 = scmp.lt.s32.totalorder %s16_s10, %s16_s10 }
   0xa   :  { %p1300_p3 = scmp.ne.s32.totalorder %s16_s10, %s1299_s18  ;;  %p1305_p5 = scmp.lt.s32.totalorder %s1299_s18, %s1299_s18 }
   0xc   :  { %p1306_p6 = por %p1305_p5, %p1304_p4 }
   0xe   :  { %p1307_p7 = pnand %p1306_p6, %p1300_p3 }
  0x10   :  { %1310 = shalt.err (!%p1307_p7)
}
  0x11   :  { %s1362_s19 = smov 128   ;;  %s1363_s20 = smov 8  }
  0x12   :  { %21 = dma.hbm_to_vmem [thread:$0]  %s2014_s0, 512, %s16_s10, [#allocation3], %s1362_s19, %s1362_s19, %s1363_s20  }
  0x13   :  { %s1364_s23 = smov [#allocation5]   ;;  %s1311_s27 = scalar_lea.hbm %s2015_s1, 512 }
  0x14   :  { %s27_s24 = sshll.u32 %s1364_s23, 4  ;;  %p1312_p8 = scmp.ne.s32.totalorder %s2015_s1, %s1311_s27  ;;  %s28_s24 = int_to_ptr.vmem [resolvable:$true] %s27_s24 }
  0x15   :  { %p1315_p9 = scmp.lt.u32.totalorder %s1311_s27, %s2015_s1 }
  0x17   :  { %p1317_p10 = pnand %p1315_p9, %p1312_p8 }
  0x19   :  { %1320 = shalt.err (!%p1317_p10)
}
  0x1a   :  { %s1321_s4 = scalar_lea.vmem %s28_s24, 512  ;;  %p1326_p12 = scmp.lt.s32.totalorder %s28_s24, %s28_s24 }
  0x1b   :  { %p1322_p11 = scmp.ne.s32.totalorder %s28_s24, %s1321_s4  ;;  %p1327_p13 = scmp.lt.s32.totalorder %s1321_s4, %s1321_s4 }
  0x1d   :  { %p1328_p0 = por %p1327_p13, %p1326_p12 }
  0x1f   :  { %p1329_p1 = pnand %p1328_p0, %p1322_p11 }
  0x21   :  { %1332 = shalt.err (!%p1329_p1)
}
  0x22   :  { %33 = dma.hbm_to_vmem [thread:$0]  %s2015_s1, 512, %s28_s24, [#allocation6], %s1362_s19, %s1362_s19, %s1363_s20  }
  0x23   :  { %1355 = dma.done.wait [#allocation3], 512  }
  0x24   :  { %1356 = vsyncadd [#allocation3], 4294966784 }
  0x25   :  { %1357 = dma.done.wait [#allocation6], 512  }
  0x26   :  { %1358 = vsyncadd [#allocation6], 4294966784  ;;  %v40_v0 = vld [vmem:[#allocation2] sm:$0xff]  ;;  %v43_v1 = vld [vmem:[#allocation2 + $0x8] sm:$0xff]  ;;  %s1371_s1 = smov [#allocation7]  }
  0x27   :  { %v1411_v2 = vld [vmem:[#allocation2 + $0x10] sm:$0xff]  ;;  %v1413_v3 = vld [vmem:[#allocation2 + $0x18] sm:$0xff]  ;;  %v1415_v4 = vld [vmem:[#allocation5] sm:$0xff]  ;;  %v1192_v10 = vadd.f32 -0.00024691355, %v40_v0  ;;  %s1176_s6 = sshll.u32 %s1371_s1, 4  ;;  %s1177_s6 = int_to_ptr.vmem [resolvable:$true] %s1176_s6 }
  0x28   :  { %v52_v5 = vld [vmem:[#allocation5 + $0x8] sm:$0xff]  ;;  %v1417_v6 = vld [vmem:[#allocation5 + $0x10] sm:$0xff]  ;;  %v1419_v7 = vld [vmem:[#allocation5 + $0x18] sm:$0xff]  ;;  %v57_v8 = vsub.f32 %v40_v0, %v1415_v4  ;;  %v1193_v13 = vadd.f32 -0.00024691355, %v43_v1  ;;  %s1333_s7 = scalar_lea.vmem %s1177_s6, 128  ;;  %p1338_p3 = scmp.lt.s32.totalorder %s1177_s6, %s1177_s6 }
  0x29   :  { %v60_v9 = vsub.f32 %v43_v1, %v52_v5  ;;  %v64_v11 = vsub.f32 %v1411_v2, %v1417_v6  ;;  %v68_v12 = vsub.f32 %v1413_v3, %v1419_v7  ;;  %v1427_v14 = vadd.f32 -0.00024691355, %v1411_v2  ;;  %p1334_p2 = scmp.ne.s32.totalorder %s1177_s6, %s1333_s7  ;;  %p1339_p4 = scmp.lt.s32.totalorder %s1333_s7, %s1333_s7 }
  0x2a   :  { %v58_v15 = vand.u32 2147483647, %v57_v8  ;;  %v1430_v17 = vadd.f32 -0.00024691355, %v1413_v3  ;;  %v82_v20 = vadd.f32 0.00012345678, %v52_v5 }
  0x2b   :  { %v61_v16 = vand.u32 2147483647, %v60_v9  ;;  %v65_v18 = vand.u32 2147483647, %v64_v11  ;;  %v69_v19 = vand.u32 2147483647, %v68_v12  ;;  %p1340_p5 = por %p1339_p4, %p1338_p3 }
  0x2c   :  { %vm59_vm0 = vcmp.lt.f32.partialorder %v58_v15, 0.00012345678  ;;  %v1433_v21 = vadd.f32 0.00012345678, %v1417_v6  ;;  %v1436_v22 = vadd.f32 0.00012345678, %v1419_v7 }
  0x2d   :  { %vm62_vm1 = vcmp.lt.f32.partialorder %v61_v16, 0.00012345678  ;;  %vm66_vm3 = vcmp.lt.f32.partialorder %v65_v18, 0.00012345678  ;;  %vm70_vm4 = vcmp.lt.f32.partialorder %v69_v19, 0.00012345678  ;;  %p1341_p6 = pnand %p1340_p5, %p1334_p2 }
  0x2e   :  { %vm63_vm2 = vmor %vm59_vm0, %vm62_vm1  ;;  %v1479_v50 = vadd.f32 0.00012345678, %v1415_v4  ;;  %v1365_v8 = vmov 683565275   ;;  %v1367_v12 = vmov 2131351028  }
  0x2f   :  { %vm67_vm5 = vmor %vm63_vm2, %vm66_vm3  ;;  %v1368_v15 = vmov 2102212464   ;;  %v1369_v18 = vmov 920167782  }
  0x30   :  { %vm1438_vm6 = vmor %vm67_vm5, %vm70_vm4 }
  0x31   :  { %v73_v24 = vsel %vm1438_vm6, %v1192_v10, %v40_v0  ;;  %v75_v25 = vsel %vm1438_vm6, %v1193_v13, %v43_v1  ;;  %v77_v26 = vsel %vm1438_vm6, %v1427_v14, %v1411_v2  ;;  %v79_v27 = vsel %vm1438_vm6, %v1430_v17, %v1413_v3 }
  0x32   :  { %v83_v28 = vsel %vm1438_vm6, %v82_v20, %v52_v5  ;;  %v85_v29 = vsel %vm1438_vm6, %v1433_v21, %v1417_v6  ;;  %v87_v30 = vsel %vm1438_vm6, %v1436_v22, %v1419_v7  ;;  %v88_v31 = vmax.f32 %v73_v24, 0.00024691355 }
  0x33   :  { %v90_v32 = vmax.f32 %v75_v25, 0.00024691355  ;;  %v98_v35 = vmax.f32 %v83_v28, 0.00012345678  ;;  %v81_v58 = vsel %vm1438_vm6, %v1479_v50, %v1415_v4  ;;  %v1366_v10 = vmov 2475754826  }
  0x34   :  { %v89_v33 = vmin.f32 %v88_v31, 359.99988  ;;  %v92_v17 = vmax.f32 %v77_v26, 0.00024691355 }
  0x35   :  { %v91_v34 = vmin.f32 %v90_v32, 179.99988  ;;  %v99_v38 = vmin.f32 %v98_v35, 179.99976 }
  0x36   :  { %v1464_v36 = vmul.f32 0.017453292, %v89_v33  ;;  %v1370_v33 = vmov 1326507024  }
  0x37   :  { %v1466_v37 = vmul.f32 0.017453292, %v91_v34  ;;  %v1476_v47 = vmul.f32 0.017453292, %v99_v38 }
  0x38   :  { %v313_v39 = vand.u32 2147483647, %v1464_v36  ;;  %v316_v42 = vand.u32 2139095040, %v1464_v36 }
  0x39   :  { %v106_v40 = vand.u32 2147483647, %v1466_v37  ;;  %v109_v41 = vand.u32 2139095040, %v1466_v37  ;;  %v591_v52 = vand.u32 2139095040, %v1476_v47 }
  0x3a   :  { %v320_v44 = vand.u32 8388607, %v313_v39  ;;  %v317_v46 = vshrl.u32 %v316_v42, 23 }
  0x3b   :  { %v110_v43 = vshrl.u32 %v109_v41, 23  ;;  %v113_v45 = vand.u32 8388607, %v106_v40  ;;  %v592_v56 = vshrl.u32 %v591_v52, 23 }
  0x3c   :  { %v1204_v49 = vadd.s32 4294967169, %v317_v46  ;;  %v321_v54 = vor.u32 8388608, %v320_v44 }
  0x3d   :  { %v1196_v48 = vadd.s32 4294967169, %v110_v43  ;;  %v114_v53 = vor.u32 8388608, %v113_v45  ;;  %v1490_v1 = vadd.s32 4294967169, %v592_v56 }
  0x3e   :  { %v323_v55 = vadd.s32 1, %v1204_v49  ;;  %v1488_v0 = vshll.u32 %v321_v54, 8 }
  0x3f   :  { %v116_v51 = vadd.s32 1, %v1196_v48  ;;  %v1486_v62 = vshll.u32 %v114_v53, 8 }
  0x40   :  { %vm324_vm8 = vcmp.gt.s32.totalorder %v323_v55, 0 }
  0x41   :  { %vm117_vm7 = vcmp.gt.s32.totalorder %v116_v51, 0  ;;  %v325_v61 = vsel %vm324_vm8, %v323_v55, 0 }
  0x42   :  { %v118_v57 = vsel %vm117_vm7, %v116_v51, 0  ;;  %v327_v63 = vand.u32 31, %v325_v61  ;;  %v1497_v20 = vshrl.u32 %v325_v61, 5 }
  0x43   :  { %v119_v59 = vshrl.u32 %v118_v57, 5  ;;  %v120_v60 = vand.u32 31, %v118_v57 }
  0x44   :  { %v328_v42 = vsub.s32 32, %v327_v63  ;;  %v330_v45 = vshll.u32 %v1365_v8, %v327_v63  ;;  %v333_v55 = vshll.u32 %v1366_v10, %v327_v63  ;;  %vm345_vm13 = vcmp.lt.s32.totalorder %v1497_v20, 1 }
  0x45   :  { %v121_v5 = vsub.s32 32, %v120_v60  ;;  %v123_v9 = vshll.u32 %v1365_v8, %v120_v60  ;;  %v126_v11 = vshll.u32 %v1366_v10, %v120_v60  ;;  %v129_v13 = vshll.u32 %v1367_v12, %v120_v60 }
  0x46   :  { %v132_v16 = vshll.u32 %v1368_v15, %v120_v60  ;;  %v135_v19 = vshll.u32 %v1369_v18, %v120_v60  ;;  %vm138_vm9 = vcmp.lt.s32.totalorder %v119_v59, 1  ;;  %vm139_vm10 = vcmp.lt.s32.totalorder %v119_v59, 2 }
  0x47   :  { %v122_v24 = vshrl.u32 %v1365_v8, %v121_v5  ;;  %v124_v25 = vshrl.u32 %v1366_v10, %v121_v5  ;;  %v127_v28 = vshrl.u32 %v1367_v12, %v121_v5  ;;  %v130_v31 = vshrl.u32 %v1368_v15, %v121_v5 }
  0x48   :  { %v133_v32 = vshrl.u32 %v1369_v18, %v121_v5  ;;  %v136_v34 = vshrl.u32 %v1370_v33, %v121_v5  ;;  %vm141_vm11 = vcmp.lt.s32.totalorder %v119_v59, 4  ;;  %vm140_vm12 = vcmp.lt.s32.totalorder %v119_v59, 3 }
  0x49   :  { %v125_v35 = vor.u32 %v124_v25, %v123_v9  ;;  %v128_v38 = vor.u32 %v127_v28, %v126_v11  ;;  %v131_v41 = vor.u32 %v130_v31, %v129_v13  ;;  %v329_v60 = vshrl.u32 %v1365_v8, %v328_v42 }
  0x4a   :  { %v134_v43 = vor.u32 %v133_v32, %v132_v16  ;;  %v137_v44 = vor.u32 %v136_v34, %v135_v19  ;;  %v331_v61 = vshrl.u32 %v1366_v10, %v328_v42  ;;  %v334_v13 = vshrl.u32 %v1367_v12, %v328_v42 }
  0x4b   :  { %v142_v46 = vsel %vm138_vm9, %v122_v24, %v125_v35  ;;  %v143_v48 = vsel %vm141_vm11, %v131_v41, 2102212464  ;;  %v146_v49 = vsel %vm138_vm9, %v125_v35, %v128_v38  ;;  %v150_v51 = vsel %vm138_vm9, %v128_v38, %v131_v41 }
  0x4c   :  { %v144_v52 = vsel %vm140_vm12, %v128_v38, %v143_v48  ;;  %v147_v53 = vsel %vm141_vm11, %v134_v43, 920167782  ;;  %v151_v54 = vsel %vm141_vm11, %v137_v44, 1326507024  ;;  %v332_v28 = vor.u32 %v331_v61, %v330_v45 }
  0x4d   :  { %v148_v56 = vsel %vm140_vm12, %v131_v41, %v147_v53  ;;  %v152_v57 = vsel %vm140_vm12, %v134_v43, %v151_v54  ;;  %v145_v5 = vsel %vm139_vm10, %v142_v46, %v144_v52  ;;  %v335_v31 = vor.u32 %v334_v13, %v333_v55 }
  0x4e   :  { %v149_v9 = vsel %vm139_vm10, %v146_v49, %v148_v56  ;;  %v153_v11 = vsel %vm139_vm10, %v150_v51, %v152_v57  ;;  %v336_v32 = vshll.u32 %v1367_v12, %v327_v63  ;;  %v337_v34 = vshrl.u32 %v1368_v15, %v328_v42 }
  0x4f   :  { %v1517_v16 = vmul.u32.u64.low %v1486_v62, %v153_v11  ;;  %v1518_v19 = vmul.u32.u64.high %v1486_v62, %v153_v11, %v1517_v16  ;;  %v1521_v24 = vmul.u32.u64.low %v1486_v62, %v149_v9  ;;  %v1522_v25 = vmul.u32.u64.high %v1486_v62, %v149_v9, %v1521_v24 }
  0x50   :  { %v339_v59 = vshll.u32 %v1368_v15, %v327_v63  ;;  %v340_v35 = vshrl.u32 %v1369_v18, %v328_v42  ;;  %v342_v38 = vshll.u32 %v1369_v18, %v327_v63  ;;  %v343_v41 = vshrl.u32 %v1370_v33, %v328_v42 }
  0x51   :  { %v161_v43 = vmul.u32 %v1486_v62, %v145_v5  ;;  %v338_v44 = vor.u32 %v337_v34, %v336_v32  ;;  %vm346_vm14 = vcmp.lt.s32.totalorder %v1497_v20, 2  ;;  %vm163_vm15 = vc.u32 %v1518_v19, %v1521_v24 }
  0x52   :  { %v164_v45 = vadd.s32 1, %v1522_v25  ;;  %v341_v46 = vor.u32 %v340_v35, %v339_v59  ;;  %vm347_vm0 = vcmp.lt.s32.totalorder %v1497_v20, 3  ;;  %v344_v48 = vor.u32 %v343_v41, %v342_v38 }
  0x53   :  { %vm348_vm1 = vcmp.lt.s32.totalorder %v1497_v20, 4  ;;  %v349_v63 = vsel %vm345_vm13, %v329_v60, %v332_v28  ;;  %v353_v42 = vsel %vm345_vm13, %v332_v28, %v335_v31  ;;  %v357_v52 = vsel %vm345_vm13, %v335_v31, %v338_v44 }
  0x54   :  { %v165_v62 = vsel %vm163_vm15, %v164_v45, %v1522_v25  ;;  %v350_v49 = vsel %vm348_vm1, %v338_v44, 2102212464  ;;  %v354_v51 = vsel %vm348_vm1, %v341_v46, 920167782  ;;  %v358_v56 = vsel %vm348_vm1, %v344_v48, 1326507024 }
  0x55   :  { %v166_v53 = vadd.s32 %v165_v62, %v161_v43  ;;  %v351_v54 = vsel %vm347_vm0, %v335_v31, %v350_v49  ;;  %v355_v55 = vsel %vm347_vm0, %v338_v44, %v354_v51  ;;  %v359_v5 = vsel %vm347_vm0, %v341_v46, %v358_v56 }
  0x56   :  { %v352_v57 = vsel %vm346_vm14, %v349_v63, %v351_v54  ;;  %v356_v61 = vsel %vm346_vm14, %v353_v42, %v355_v55  ;;  %v598_v9 = vadd.s32 1, %v1490_v1  ;;  %v360_v11 = vsel %vm346_vm14, %v357_v52, %v359_v5 }
  0x57   :  { %v167_v60 = vadd.s32 536870912, %v166_v53  ;;  %v1548_v13 = vmul.u32.u64.low %v1488_v0, %v356_v61  ;;  %v1549_v16 = vmul.u32.u64.high %v1488_v0, %v356_v61, %v1548_v13  ;;  %v96_v25 = vmax.f32 %v81_v58, 0.00012345678 }
  0x58   :  { %v1558_v28 = vmul.u32.u64.low %v1488_v0, %v360_v11  ;;  %v1559_v31 = vmul.u32.u64.high %v1488_v0, %v360_v11, %v1558_v28  ;;  %vm599_vm2 = vcmp.gt.s32.totalorder %v598_v9, 0  ;;  %v368_v20 = vmul.u32 %v1488_v0, %v352_v57 }
  0x59   :  { %v1561_v1 = vshrl.u32 %v167_v60, 30  ;;  %v600_v32 = vsel %vm599_vm2, %v598_v9, 0  ;;  %v371_v59 = vadd.s32 1, %v1549_v16  ;;  %v588_v35 = vand.u32 2147483647, %v1476_v47 }
  0x5a   :  { %v97_v38 = vmin.f32 %v96_v25, 359.99976  ;;  %vm370_vm3 = vc.u32 %v1559_v31, %v1548_v13  ;;  %v602_v58 = vand.u32 31, %v600_v32  ;;  %v162_v9 = vadd.s32 %v1521_v24, %v1518_v19 }
  0x5b   :  { %v169_v34 = vshll.u32 %v1561_v1, 30  ;;  %v372_v50 = vsel %vm370_vm3, %v371_v59, %v1549_v16  ;;  %v595_v0 = vand.u32 8388607, %v588_v35  ;;  %v601_v60 = vshrl.u32 %v600_v32, 5 }
  0x5c   :  { %v373_v41 = vadd.s32 %v372_v50, %v368_v20  ;;  %v1572_v45 = vmul.f32 0.017453292, %v97_v38  ;;  %v603_v48 = vsub.s32 32, %v602_v58  ;;  %v605_v49 = vshll.u32 %v1365_v8, %v602_v58 }
  0x5d   :  { %v170_v4 = vsub.s32 %v166_v53, %v169_v34  ;;  %v596_v42 = vor.u32 8388608, %v595_v0  ;;  %v608_v54 = vshll.u32 %v1366_v10, %v602_v58  ;;  %v611_v56 = vshll.u32 %v1367_v12, %v602_v58 }
  0x5e   :  { %v374_v44 = vadd.s32 536870912, %v373_v41  ;;  %v798_v51 = vand.u32 2139095040, %v1572_v45  ;;  %v606_v53 = vshrl.u32 %v1366_v10, %v603_v48  ;;  %v609_v55 = vshrl.u32 %v1367_v12, %v603_v48 }
  0x5f   :  { %v172_v43 = vsub.s32 0, %v170_v4  ;;  %v612_v57 = vshrl.u32 %v1368_v15, %v603_v48  ;;  %v614_v61 = vshll.u32 %v1368_v15, %v602_v58  ;;  %v615_v5 = vshrl.u32 %v1369_v18, %v603_v48 }
  0x60   :  { %v1574_v62 = vshrl.u32 %v374_v44, 30  ;;  %v1587_v11 = vshll.u32 %v596_v42, 8  ;;  %v617_v28 = vshll.u32 %v1369_v18, %v602_v58  ;;  %v618_v20 = vshrl.u32 %v1370_v33, %v603_v48 }
  0x61   :  { %v1197_v46 = vmin.u32 %v172_v43, %v170_v4  ;;  %v799_v50 = vshrl.u32 %v798_v51, 23  ;;  %v607_v43 = vor.u32 %v606_v53, %v605_v49  ;;  %v610_v0 = vor.u32 %v609_v55, %v608_v54 }
  0x62   :  { %v376_v25 = vshll.u32 %v1574_v62, 30  ;;  %v613_v44 = vor.u32 %v612_v57, %v611_v56  ;;  %vm620_vm5 = vcmp.lt.s32.totalorder %v601_v60, 1  ;;  %vm623_vm7 = vcmp.lt.s32.totalorder %v601_v60, 4 }
  0x63   :  { %v174_v63 = vclz %v1197_v46  ;;  %v616_v46 = vor.u32 %v615_v5, %v614_v61  ;;  %v619_v42 = vor.u32 %v618_v20, %v617_v28  ;;  %vm622_vm8 = vcmp.lt.s32.totalorder %v601_v60, 3 }
  0x64   :  { %v1592_v32 = vsub.s32 %v373_v41, %v376_v25  ;;  %vm621_vm9 = vcmp.lt.s32.totalorder %v601_v60, 2  ;;  %v625_v49 = vsel %vm623_vm7, %v613_v44, 2102212464  ;;  %v628_v51 = vsel %vm620_vm5, %v607_v43, %v610_v0 }
  0x65   :  { %v1198_v52 = vadd.s32 4294967294, %v174_v63  ;;  %v604_v63 = vshrl.u32 %v1365_v8, %v603_v48  ;;  %v629_v53 = vsel %vm623_vm7, %v616_v46, 920167782  ;;  %v632_v48 = vsel %vm620_vm5, %v610_v0, %v613_v44 }
  0x66   :  { %v630_v41 = vsel %vm622_vm8, %v613_v44, %v629_v53  ;;  %vm108_vm10 = vcmp.lt.s32.totalorder %v1466_v37, 0  ;;  %v379_v56 = vsub.s32 0, %v1592_v32  ;;  %v633_v61 = vsel %vm623_vm7, %v619_v42, 1326507024 }
  0x67   :  { %vm1199_vm4 = vcmp.lt.s32.totalorder %v1198_v52, 0  ;;  %v624_v57 = vsel %vm620_vm5, %v604_v63, %v607_v43  ;;  %v631_v25 = vsel %vm621_vm9, %v628_v51, %v630_v41  ;;  %v634_v28 = vsel %vm622_vm8, %v616_v46, %v633_v61 }
  0x68   :  { %v177_v16 = vsel %vm1199_vm4, 0, %v1198_v52  ;;  %v94_v20 = vmax.f32 %v79_v27, 0.00024691355  ;;  %v1205_v44 = vmin.u32 %v379_v56, %v1592_v32  ;;  %vm107_vm11 = vcmp.le.f32.partialorder %v106_v40, 0.7853982 }
  0x69   :  { %v178_v34 = vsub.s32 32, %v177_v16  ;;  %v179_v59 = vshll.u32 %v170_v4, %v177_v16  ;;  %v182_v38 = vsub.s32 4294967266, %v177_v16  ;;  %v192_v4 = vsub.s32 4, %v1561_v1 }
  0x6a   :  { %v1221_v16 = vadd.s32 4294967169, %v799_v50  ;;  %v381_v14 = vclz %v1205_v44  ;;  %v93_v40 = vmin.f32 %v92_v17, 179.99988  ;;  %v795_v41 = vand.u32 2147483647, %v1572_v45 }
  0x6b   :  { %v180_v19 = vshrl.u32 %v162_v9, %v178_v34  ;;  %v183_v24 = vadd.s32 127, %v182_v38  ;;  %v626_v9 = vsel %vm622_vm8, %v610_v0, %v625_v49  ;;  %v193_v34 = vsel %vm108_vm10, %v192_v4, %v1561_v1 }
  0x6c   :  { %v805_v0 = vadd.s32 1, %v1221_v16  ;;  %v627_v46 = vsel %vm621_vm9, %v624_v57, %v626_v9  ;;  %v95_v1 = vmin.f32 %v94_v20, 179.99988  ;;  %v1637_v63 = vsel %vm107_vm11, 0, %v193_v34 }
  0x6d   :  { %v181_v58 = vor.u32 %v180_v19, %v179_v59  ;;  %v184_v52 = vshll.u32 %v183_v24, 23  ;;  %v635_v59 = vsel %vm621_vm9, %v632_v48, %v634_v28  ;;  %v643_v42 = vmul.u32 %v1587_v11, %v627_v46 }
  0x6e   :  { %v1618_v50 = vmul.u32.u64.low %v1587_v11, %v635_v59  ;;  %v1619_v43 = vmul.u32.u64.high %v1587_v11, %v635_v59, %v1618_v50  ;;  %v1624_v19 = vmul.u32.u64.low %v1587_v11, %v631_v25  ;;  %v1625_v3 = vmul.u32.u64.high %v1587_v11, %v631_v25, %v1624_v19 }
  0x6f   :  { %v185_v54 = vor.u32 4788187, %v184_v52  ;;  %v188_v55 = vcvt.s32.f32 %v181_v58  ;;  %vm806_vm12 = vcmp.gt.s32.totalorder %v805_v0, 0  ;;  %v199_v52 = vadd.s32 3, %v1637_v63 }
  0x70   :  { %v807_v24 = vsel %vm806_vm12, %v805_v0, 0  ;;  %vm645_vm13 = vc.u32 %v1619_v43, %v1624_v19  ;;  %v646_v26 = vadd.s32 1, %v1625_v3  ;;  %v522_v16 = vmul.f32 0.017453292, %v95_v1 }
  0x71   :  { %v186_v5 = vand.u32 2147483647, %v185_v54  ;;  %v809_v58 = vand.u32 31, %v807_v24  ;;  %v1206_v11 = vadd.s32 4294967294, %v381_v14  ;;  %v520_v53 = vmul.f32 0.017453292, %v93_v40 }
  0x72   :  { %v647_v4 = vsel %vm645_vm13, %v646_v26, %v1625_v3  ;;  %vm198_vm14 = vweird.f32 %v1466_v37  ;;  %v523_v57 = vmul.f32 %v522_v16, %v522_v16  ;;  %v802_v50 = vand.u32 8388607, %v795_v41 }
  0x73   :  { %v189_v38 = vmul.f32 %v188_v55, %v186_v5  ;;  %v648_v49 = vadd.s32 %v647_v4, %v643_v42  ;;  %v1646_v51 = vsub.s32 32, %v809_v58  ;;  %v200_v55 = vand.u32 3, %v199_v52 }
  0x74   :  { %v821_v48 = vshll.u32 %v1368_v15, %v809_v58  ;;  %v1655_v5 = vshrl.u32 %v807_v24, 5  ;;  %vm1207_vm15 = vcmp.lt.s32.totalorder %v1206_v11, 0  ;;  %v812_v9 = vshll.u32 %v1365_v8, %v809_v58 }
  0x75   :  { %v190_v27 = vxor.u32 2147483648, %v189_v38  ;;  %v649_v54 = vadd.s32 536870912, %v648_v49  ;;  %v822_v56 = vshrl.u32 %v1369_v18, %v1646_v51  ;;  %v813_v25 = vshrl.u32 %v1366_v10, %v1646_v51 }
  0x76   :  { %v815_v28 = vshll.u32 %v1366_v10, %v809_v58  ;;  %v816_v34 = vshrl.u32 %v1367_v12, %v1646_v51  ;;  %v818_v59 = vshll.u32 %v1367_v12, %v809_v58  ;;  %vm201_vm0 = vcmp.lt.s32.totalorder %v200_v55, 2 }
  0x77   :  { %v191_v60 = vsel %vm108_vm10, %v190_v27, %v189_v38  ;;  %v1653_v61 = vshrl.u32 %v649_v54, 30  ;;  %v819_v38 = vshrl.u32 %v1368_v15, %v1646_v51  ;;  %vm202_vm1 = vcmp.eq.s32.totalorder %v200_v55, 0 }
  0x78   :  { %v194_v2 = vsel %vm107_vm11, %v1466_v37, %v191_v60  ;;  %v823_v0 = vor.u32 %v822_v56, %v821_v48  ;;  %vm205_vm2 = vcmp.eq.s32.totalorder %v200_v55, 2  ;;  %v1671_v10 = vsel %vm1207_vm15, 0, %v1206_v11 }
  0x79   :  { %1257 = vcosq.f32 %v194_v2  ;;  %v651_v20 = vshll.u32 %v1653_v61, 30  ;;  %vm830_vm3 = vcmp.lt.s32.totalorder %v1655_v5, 4  ;;  %v814_v15 = vor.u32 %v813_v25, %v812_v9 }
  0x7a   :  { %1259 = vsinq.f32 %v194_v2  ;;  %v824_v17 = vshll.u32 %v1369_v18, %v809_v58  ;;  %v825_v27 = vshrl.u32 %v1370_v33, %v1646_v51  ;;  %v817_v60 = vor.u32 %v816_v34, %v815_v28 }
  0x7b   :  { %v1673_v46 = vsub.s32 %v648_v49, %v651_v20  ;;  %v820_v42 = vor.u32 %v819_v38, %v818_v59  ;;  %vm827_vm4 = vcmp.lt.s32.totalorder %v1655_v5, 1  ;;  %vm829_vm5 = vcmp.lt.s32.totalorder %v1655_v5, 3 }
  0x7c   :  { %v836_v18 = vsel %vm830_vm3, %v823_v0, 920167782  ;;  %v524_v14 = vmul.f32 0.083333336, %v523_v57  ;;  %v803_v40 = vor.u32 8388608, %v802_v50  ;;  %v389_v52 = vsub.s32 4294967266, %v1671_v10 }
  0x7d   :  { %v654_v24 = vsub.s32 0, %v1673_v46  ;;  %v826_v4 = vor.u32 %v825_v27, %v824_v17  ;;  %vm828_vm7 = vcmp.lt.s32.totalorder %v1655_v5, 2  ;;  %v835_v11 = vsel %vm827_vm4, %v814_v15, %v817_v60 }
  0x7e   :  { %v837_v54 = vsel %vm829_vm5, %v820_v42, %v836_v18  ;;  %v525_v55 = vadd.f32 1e-06, %v524_v14  ;;  %v843_v57 = vshll.u32 %v803_v40, 8  ;;  %v369_v9 = vadd.s32 %v1548_v13, %v1559_v31 }
  0x7f   :  { %v1214_v26 = vmin.u32 %v654_v24, %v1673_v46  ;;  %v385_v25 = vsub.s32 32, %v1671_v10  ;;  %v838_v20 = vsel %vm828_vm7, %v835_v11, %v837_v54  ;;  %v390_v34 = vadd.s32 127, %v389_v52 }
  0x80   :  { %v644_v59 = vadd.s32 %v1624_v19, %v1619_v43  ;;  %v386_v38 = vshll.u32 %v1592_v32, %v1671_v10  ;;  %v811_v13 = vshrl.u32 %v1365_v8, %v1646_v51  ;;  %v832_v27 = vsel %vm830_vm3, %v820_v42, 2102212464 }
  0x81   :  { %v656_v49 = vclz %v1214_v26  ;;  %v387_v43 = vshrl.u32 %v369_v9, %v385_v25  ;;  %v839_v18 = vsel %vm827_vm4, %v817_v60, %v820_v42  ;;  %v391_v10 = vshll.u32 %v390_v34, 23 }
  0x82   :  { %v831_v40 = vsel %vm827_vm4, %v811_v13, %v814_v15  ;;  %vm590_vm10 = vcmp.lt.s32.totalorder %v1476_v47, 0  ;;  %vm1767_vm11 = vcmp.le.f32.partialorder %v313_v39, 0.7853982  ;;  %vm315_vm12 = vcmp.lt.s32.totalorder %v1464_v36, 0 }
  0x83   :  { %v1669_v44 = vpop.eup %1257  ;;  %v1215_v56 = vadd.s32 4294967294, %v656_v49  ;;  %v388_v49 = vor.u32 %v387_v43, %v386_v38  ;;  %v392_v11 = vor.u32 4788187, %v391_v10  ;;  %vm1774_vm6 = vcmp.le.f32.partialorder %v588_v35, 0.7853982 }
  0x84   :  { %v1676_v3 = vpop.eup %1259  ;;  %v206_v12 = vxor.u32 2147483648, %v1669_v44  ;;  %vm680_vm13 = vweird.f32 %v1476_v47 }
  0x85   :  { %v203_v1 = vxor.u32 2147483648, %v1676_v3  ;;  %vm1216_vm8 = vcmp.lt.s32.totalorder %v1215_v56, 0 }
  0x86   :  { %v207_v2 = vsel %vm205_vm2, %v206_v12, %v1676_v3  ;;  %v659_v17 = vsel %vm1216_vm8, 0, %v1215_v56 }
  0x87   :  { %v204_v33 = vsel %vm202_vm1, %v1669_v44, %v203_v1  ;;  %v660_v31 = vsub.s32 32, %v659_v17  ;;  %v664_v51 = vsub.s32 4294967266, %v659_v17 }
  0x88   :  { %v208_v58 = vsel %vm201_vm0, %v204_v33, %v207_v2  ;;  %v1723_v24 = vmul.u32.u64.low %v843_v57, %v838_v20  ;;  %v1724_v2 = vmul.u32.u64.high %v843_v57, %v838_v20, %v1723_v24  ;;  %v661_v33 = vshll.u32 %v1673_v46, %v659_v17 }
  0x89   :  { %v1701_v16 = vsel %vm198_vm14, nan, %v208_v58  ;;  %v662_v8 = vshrl.u32 %v644_v59, %v660_v31  ;;  %v833_v58 = vsel %vm829_vm5, %v817_v60, %v832_v27  ;;  %v395_v20 = vcvt.s32.f32 %v388_v49 }
  0x8a   :  { %v521_v48 = vmul.f32 %v520_v53, %v1701_v16  ;;  %v840_v53 = vsel %vm830_vm3, %v826_v4, 1326507024  ;;  %v834_v46 = vsel %vm828_vm7, %v831_v40, %v833_v58  ;;  %v853_v9 = vadd.s32 1, %v1724_v2 }
  0x8b   :  { %v841_v32 = vsel %vm829_vm5, %v823_v0, %v840_v53  ;;  %v663_v4 = vor.u32 %v662_v8, %v661_v33  ;;  %v665_v0 = vadd.s32 127, %v664_v51  ;;  %v850_v60 = vmul.u32 %v843_v57, %v834_v46 }
  0x8c   :  { %v526_v28 = vmul.f32 %v521_v48, %v521_v48  ;;  %v842_v42 = vsel %vm828_vm7, %v839_v18, %v841_v32  ;;  %v674_v17 = vsub.s32 4, %v1653_v61  ;;  %v1758_v31 = vmax.f32 %v87_v30, 0.00012345678 }
  0x8d   :  { %v1740_v54 = vmul.u32.u64.low %v843_v57, %v842_v42  ;;  %v1741_v48 = vmul.u32.u64.high %v843_v57, %v842_v42, %v1740_v54  ;;  %v666_v15 = vshll.u32 %v665_v0, 23  ;;  %v670_v25 = vcvt.s32.f32 %v663_v4 }
  0x8e   :  { %v527_v50 = vmul.f32 0.083333336, %v526_v28  ;;  %v393_v28 = vand.u32 2147483647, %v392_v11  ;;  %v100_v57 = vmax.f32 %v85_v29, 0.00012345678  ;;  %v675_v30 = vsel %vm590_vm10, %v674_v17, %v1653_v61 }
  0x8f   :  { %vm852_vm9 = vc.u32 %v1741_v48, %v1723_v24  ;;  %v1795_v61 = vsel %vm1774_vm6, 0, %v675_v30  ;;  %vm797_vm3 = vcmp.lt.s32.totalorder %v1572_v45, 0  ;;  %vm1849_vm7 = vcmp.le.f32.partialorder %v795_v41, 0.7853982 }
  0x90   :  { %v528_v19 = vadd.f32 1e-06, %v527_v50  ;;  %v854_v53 = vsel %vm852_vm9, %v853_v9, %v1724_v2  ;;  %v396_v27 = vmul.f32 %v395_v20, %v393_v28  ;;  %v101_v9 = vmin.f32 %v100_v57, 179.99976 }
  0x91   :  { %v855_v38 = vadd.s32 %v854_v53, %v850_v60  ;;  %v399_v60 = vsub.s32 4, %v1574_v62 }
  0x92   :  { %v529_v14 = vmul.f32 %v528_v19, %v525_v55  ;;  %v532_v26 = vadd.f32 %v528_v19, %v525_v55  ;;  %v535_v52 = vsub.f32 %v525_v55, %v528_v19  ;;  %v667_v55 = vor.u32 4788187, %v666_v15 }
  0x93   :  { %v856_v2 = vadd.s32 536870912, %v855_v38  ;;  %v397_v39 = vxor.u32 2147483648, %v396_v27  ;;  %v681_v15 = vadd.s32 3, %v1795_v61 }
  0x94   :  { %1261 = vrcp.f32 %v529_v14  ;;  %v536_v56 = vand.u32 2147483647, %v535_v52  ;;  %v533_v34 = vmul.f32 0.5, %v532_v26  ;;  %v668_v59 = vand.u32 2147483647, %v667_v55 }
  0x95   :  { %v1778_v21 = vshrl.u32 %v856_v2, 30  ;;  %v398_v0 = vsel %vm315_vm12, %v397_v39, %v396_v27  ;;  %v1002_v2 = vmul.f32 0.017453292, %v101_v9 }
  0x96   :  { %v537_v5 = vmul.f32 0.25, %v536_v56  ;;  %v671_v50 = vmul.f32 %v670_v25, %v668_v59  ;;  %v401_v28 = vsel %vm1767_vm11, %v1464_v36, %v398_v0 }
  0x97   :  { %v858_v35 = vshll.u32 %v1778_v21, 30 }
  0x98   :  { %v672_v18 = vxor.u32 2147483648, %v671_v50 }
  0x99   :  { %v1797_v58 = vsub.s32 %v855_v38, %v858_v35  ;;  %v682_v38 = vand.u32 3, %v681_v15  ;;  %v1826_v35 = vand.u32 3, %v1637_v63 }
  0x9a   :  { %v673_v10 = vsel %vm590_vm10, %v672_v18, %v671_v50  ;;  %v400_v50 = vsel %vm315_vm12, %v399_v60, %v1574_v62 }
  0x9b   :  { %v676_v40 = vsel %vm1774_vm6, %v1476_v47, %v673_v10  ;;  %v861_v49 = vsub.s32 0, %v1797_v58  ;;  %v402_v62 = vsel %vm1767_vm11, 0, %v400_v50  ;;  %vm684_vm0 = vcmp.eq.s32.totalorder %v682_v38, 0 }
  0x9c   :  { %1263 = vcosq.f32 %v676_v40  ;;  %vm687_vm1 = vcmp.eq.s32.totalorder %v682_v38, 2  ;;  %vm683_vm2 = vcmp.lt.s32.totalorder %v682_v38, 2  ;;  %vm305_vm4 = vcmp.eq.s32.totalorder %v1826_v35, 0 }
  0x9d   :  { %1265 = vsinq.f32 %v676_v40  ;;  %v1222_v25 = vmin.u32 %v861_v49, %v1797_v58  ;;  %vm308_vm5 = vcmp.eq.s32.totalorder %v1826_v35, 2  ;;  %vm304_vm8 = vcmp.lt.s32.totalorder %v1826_v35, 2 }
  0x9e   :  { %v1262_v13 = vpop.eup %1261  ;;  %v881_v50 = vsub.s32 4, %v1778_v21 }
  0x9f   :  { %v1760_v43 = vmul.f32 %v1262_v13, %v533_v34  ;;  %v1762_v19 = vmul.f32 %v1262_v13, %v537_v5  ;;  %v103_v5 = vmin.f32 %v1758_v31, 179.99976  ;;  %v863_v53 = vclz %v1222_v25 }
  0xa0   :  { %v851_v31 = vadd.s32 %v1723_v24, %v1741_v48 }
  0xa1   :  { %v545_v22 = vmul.f32 %v1760_v43, %v1760_v43  ;;  %v546_v23 = vmul.f32 %v1762_v19, %v1762_v19  ;;  %v1212_v29 = vadd.f32 -2.0, %v1760_v43  ;;  %v570_v32 = vmul.f32 8.0, %v1760_v43 }
  0xa2   :  { %v1223_v13 = vadd.s32 4294967294, %v863_v53  ;;  %v578_v27 = vadd.f32 1e-06, %v1762_v19  ;;  %v1004_v18 = vmul.f32 0.017453292, %v103_v5 }
  0xa3   :  { %v547_v33 = vmul.f32 4.0, %v546_v23  ;;  %v557_v8 = vsub.f32 %v545_v22, %v1760_v43  ;;  %v565_v51 = vmul.f32 %v1212_v29, %v1760_v43  ;;  %v566_v14 = vmul.f32 8.0, %v546_v23 }
  0xa4   :  { %v571_v26 = vmul.f32 16.0, %v546_v23  ;;  %vm1224_vm15 = vcmp.lt.s32.totalorder %v1223_v13, 0  ;;  %v579_v24 = vmul.f32 4.0, %v578_v27  ;;  %v552_v63 = vadd.f32 1.837877, %v1760_v43 }
  0xa5   :  { %v548_v52 = vsub.f32 %v545_v22, %v547_v33  ;;  %v558_v42 = vsub.f32 %v557_v8, %v547_v33  ;;  %v567_v4 = vsub.f32 2.0, %v566_v14  ;;  %v406_v14 = vadd.s32 3, %v402_v62 }
  0xa6   :  { %v572_v46 = vadd.f32 %v571_v26, %v570_v32  ;;  %v1816_v7 = vpop.eup %1263  ;;  %v1831_v26 = vand.u32 3, %v402_v62 }
  0xa7   :  { %v549_v11 = vadd.f32 1e-06, %v548_v52  ;;  %v559_v54 = vmul.f32 6.2831855, %v558_v42  ;;  %v568_v56 = vadd.f32 %v567_v4, %v565_v51  ;;  %v688_v29 = vxor.u32 2147483648, %v1816_v7 }
  0xa8   :  { %v573_v55 = vadd.f32 4.0, %v572_v46  ;;  %v407_v25 = vand.u32 3, %v406_v14  ;;  %vm511_vm9 = vcmp.lt.s32.totalorder %v1831_v26, 2  ;;  %vm515_vm10 = vcmp.eq.s32.totalorder %v1831_v26, 2 }
  0xa9   :  { %1267 = vlog2.f32 %v549_v11  ;;  %v560_v20 = vmax.f32 %v559_v54, 0.0  ;;  %v569_v34 = vmul.f32 %v568_v56, %v545_v22  ;;  %v866_v22 = vsel %vm1224_vm15, 0, %v1223_v13 }
  0xaa   :  { %1269 = vrcp.f32 %v549_v11  ;;  %v574_v59 = vmul.f32 %v573_v55, %v546_v23  ;;  %v1820_v23 = vpop.eup %1265  ;;  %v867_v30 = vsub.s32 32, %v866_v22  ;;  %v868_v39 = vshll.u32 %v1797_v58, %v866_v22 }
  0xab   :  { %1271 = vcosq.f32 %v401_v28  ;;  %v561_v57 = vadd.f32 1e-06, %v560_v20  ;;  %v871_v32 = vsub.s32 4294967266, %v866_v22  ;;  %v685_v48 = vxor.u32 2147483648, %v1820_v23 }
  0xac   :  { %v575_v17 = vadd.f32 %v574_v59, %v569_v34  ;;  %1273 = vsinq.f32 %v401_v28  ;;  %v689_v6 = vsel %vm687_vm1, %v688_v29, %v1820_v23  ;;  %v869_v33 = vshrl.u32 %v851_v31, %v867_v30 }
  0xad   :  { %v562_v10 = vmul.f32 0.15915494, %v561_v57  ;;  %v872_v8 = vadd.s32 127, %v871_v32  ;;  %v686_v40 = vsel %vm684_vm0, %v1816_v7, %v685_v48  ;;  %v1005_v58 = vmul.f32 %v1004_v18, %v1004_v18 }
  0xae   :  { %v690_v4 = vsel %vm683_vm2, %v686_v40, %v689_v6  ;;  %v870_v0 = vor.u32 %v869_v33, %v868_v39  ;;  %vm408_vm11 = vcmp.lt.s32.totalorder %v407_v25, 2  ;;  %vm409_vm12 = vcmp.eq.s32.totalorder %v407_v25, 0 }
  0xaf   :  { %v1843_v54 = vsel %vm680_vm13, nan, %v690_v4  ;;  %v873_v60 = vshll.u32 %v872_v8, 23  ;;  %v1006_v34 = vmul.f32 0.083333336, %v1005_v58  ;;  %vm512_vm6 = vcmp.eq.s32.totalorder %v1831_v26, 0 }
  0xb0   :  { %v1003_v20 = vmul.f32 %v1002_v2, %v1843_v54  ;;  %v877_v53 = vcvt.s32.f32 %v870_v0  ;;  %vm412_vm15 = vcmp.eq.s32.totalorder %v407_v25, 2  ;;  %v785_v30 = vand.u32 3, %v1795_v61 }
  0xb1   :  { %v874_v59 = vor.u32 4788187, %v873_v60  ;;  %v1007_v18 = vadd.f32 1e-06, %v1006_v34  ;;  %v882_v39 = vsel %vm797_vm3, %v881_v50, %v1778_v21  ;;  %vm405_vm2 = vweird.f32 %v1464_v36 }
  0xb2   :  { %vm787_vm0 = vcmp.eq.s32.totalorder %v785_v30, 0  ;;  %vm790_vm1 = vcmp.eq.s32.totalorder %v785_v30, 2 }
  0xb3   :  { %v1268_v51 = vpop.eup %1267  ;;  %v875_v27 = vand.u32 2147483647, %v874_v59  ;;  %v792_v36 = vsel %vm790_vm1, %v688_v29, %v1820_v23  ;;  %v1023_v29 = vsub.f32 0.0, %v1843_v54 }
  0xb4   :  { %v1270_v52 = vpop.eup %1269  ;;  %v551_v42 = vmul.f32 0.6931472, %v1268_v51 }
  0xb5   :  { %v1839_v46 = vmul.f32 %v1270_v52, %v562_v10  ;;  %v576_v49 = vmul.f32 %v1270_v52, %v575_v17  ;;  %v580_v11 = vmul.f32 %v1270_v52, %v579_v24  ;;  %v1272_v56 = vpop.eup %1271  ;;  %v1008_v17 = vmul.f32 %v1003_v20, %v1003_v20 }
  0xb6   :  { %v553_v15 = vmul.f32 0.5, %v551_v42  ;;  %v1274_v55 = vpop.eup %1273  ;;  %v413_v57 = vxor.u32 2147483648, %v1272_v56  ;;  %v878_v22 = vmul.f32 %v877_v53, %v875_v27  ;;  %v307_v10 = vsel %vm305_vm4, %v1669_v44, %v203_v1 }
  0xb7   :  { %v577_v28 = vmul.f32 %v1270_v52, %v576_v49  ;;  %v1858_v38 = vmul.f32 %v580_v11, %v1762_v19  ;;  %v410_v13 = vxor.u32 2147483648, %v1274_v55  ;;  %v1009_v62 = vmul.f32 0.083333336, %v1008_v17 }
  0xb8   :  { %v1855_v5 = vsub.f32 %v552_v63, %v553_v15  ;;  %v310_v24 = vsel %vm308_vm5, %v206_v12, %v1676_v3  ;;  %v517_v61 = vsel %vm515_vm10, %v413_v57, %v1274_v55  ;;  %v879_v6 = vxor.u32 2147483648, %v878_v22 }
  0xb9   :  { %v581_v41 = vsub.f32 1.0, %v577_v28  ;;  %v1010_v32 = vadd.f32 1e-06, %v1009_v62  ;;  %v514_v33 = vsel %vm512_vm6, %v1272_v56, %v410_v13  ;;  %v411_v14 = vsel %vm409_vm12, %v1272_v56, %v410_v13 }
  0xba   :  { %v414_v40 = vsel %vm412_vm15, %v413_v57, %v1274_v55  ;;  %v880_v58 = vsel %vm797_vm3, %v879_v6, %v878_v22  ;;  %v884_v1 = vsel %vm1849_vm7, 0, %v882_v39  ;;  %v518_v3 = vsel %vm511_vm9, %v514_v33, %v517_v61 }
  0xbb   :  { %v1863_v2 = vadd.f32 %v581_v41, %v580_v11  ;;  %v1865_v31 = vsub.f32 %v581_v41, %v580_v11  ;;  %v1011_v8 = vmul.f32 %v1010_v32, %v1007_v18  ;;  %v1014_v21 = vadd.f32 %v1010_v32, %v1007_v18 }
  0xbc   :  { %v1017_v51 = vsub.f32 %v1007_v18, %v1010_v32  ;;  %v883_v44 = vsel %vm1849_vm7, %v1572_v45, %v880_v58  ;;  %v311_v12 = vsel %vm304_vm8, %v307_v10, %v310_v24  ;;  %v415_v52 = vsel %vm408_vm11, %v411_v14, %v414_v40 }
  0xbd   :  { %1275 = vrcp.f32 %v1011_v8  ;;  %v888_v42 = vadd.s32 3, %v884_v1  ;;  %vm786_vm3 = vcmp.lt.s32.totalorder %v785_v30, 2  ;;  %v789_v63 = vsel %vm787_vm0, %v1816_v7, %v685_v48 }
  0xbe   :  { %1277 = vcosq.f32 %v883_v44  ;;  %v1018_v4 = vand.u32 2147483647, %v1017_v51  ;;  %v1903_v26 = vsel %vm405_vm2, nan, %v518_v3  ;;  %v312_v35 = vsel %vm198_vm14, nan, %v311_v12 }
  0xbf   :  { %1279 = vsinq.f32 %v883_v44  ;;  %v416_v0 = vsel %vm405_vm2, nan, %v415_v52  ;;  %v992_v49 = vand.u32 3, %v884_v1  ;;  %v541_v11 = vsub.f32 0.0, %v1701_v16 }
  0xc0   :  { %v793_v56 = vsel %vm786_vm3, %v789_v63, %v792_v36  ;;  %vm887_vm4 = vweird.f32 %v1572_v45  ;;  %v889_v15 = vand.u32 3, %v888_v42  ;;  %v1911_v48 = vmul.f32 %v1903_v26, %v1701_v16 }
  0xc1   :  { %v1015_v7 = vmul.f32 0.5, %v1014_v21  ;;  %v1019_v23 = vmul.f32 0.25, %v1018_v4  ;;  %v1915_v9 = vmul.f32 %v416_v0, %v1701_v16  ;;  %v1918_v37 = vmul.f32 %v1903_v26, %v312_v35 }
  0xc2   :  { %v1920_v60 = vmul.f32 %v416_v0, %v312_v35  ;;  %v1922_v55 = vsub.f32 0.0, %v416_v0  ;;  %v794_v25 = vsel %vm680_vm13, nan, %v793_v56  ;;  %vm993_vm14 = vcmp.lt.s32.totalorder %v992_v49, 2 }
  0xc3   :  { %vm994_vm5 = vcmp.eq.s32.totalorder %v992_v49, 0  ;;  %vm997_vm7 = vcmp.eq.s32.totalorder %v992_v49, 2  ;;  %vm890_vm8 = vcmp.lt.s32.totalorder %v889_v15, 2  ;;  %vm891_vm9 = vcmp.eq.s32.totalorder %v889_v15, 0 }
  0xc4   :  { %vm894_vm10 = vcmp.eq.s32.totalorder %v889_v15, 2  ;;  %v1068_v20 = vmul.f32 %v794_v25, %v312_v35  ;;  %v1073_v53 = vmul.f32 %v1023_v29, %v312_v35  ;;  %v1081_v41 = vmul.f32 %v794_v25, %v541_v11 }
  0xc5   :  { %v1931_v17 = vmul.f32 0.5, %v1863_v2  ;;  %v1934_v47 = vmul.f32 0.5, %v1865_v31  ;;  %v1086_v57 = vmul.f32 %v1023_v29, %v541_v11 }
  0xc7   :  { %v1276_v28 = vpop.eup %1275 }
  0xc8   :  { %v1278_v16 = vpop.eup %1277  ;;  %v1926_v34 = vmul.f32 %v1276_v28, %v1015_v7  ;;  %v1928_v59 = vmul.f32 %v1276_v28, %v1019_v23 }
  0xc9   :  { %v1280_v50 = vpop.eup %1279  ;;  %v895_v13 = vxor.u32 2147483648, %v1278_v16 }
  0xca   :  { %v892_v27 = vxor.u32 2147483648, %v1280_v50  ;;  %v1027_v18 = vmul.f32 %v1926_v34, %v1926_v34  ;;  %v1028_v62 = vmul.f32 %v1928_v59, %v1928_v59  ;;  %v1941_v22 = vadd.f32 1.837877, %v1926_v34 }
  0xcb   :  { %v896_v30 = vsel %vm894_vm10, %v895_v13, %v1280_v50  ;;  %v999_v2 = vsel %vm997_vm7, %v895_v13, %v1280_v50  ;;  %v1229_v39 = vadd.f32 -2.0, %v1926_v34  ;;  %v1052_v31 = vmul.f32 8.0, %v1926_v34 }
  0xcc   :  { %v893_v32 = vsel %vm891_vm9, %v1278_v16, %v892_v27  ;;  %v996_v10 = vsel %vm994_vm5, %v1278_v16, %v892_v27  ;;  %v1029_v24 = vmul.f32 4.0, %v1028_v62  ;;  %v1039_v61 = vsub.f32 %v1027_v18, %v1926_v34 }
  0xcd   :  { %v897_v6 = vsel %vm890_vm8, %v893_v32, %v896_v30  ;;  %v1000_v33 = vsel %vm993_vm14, %v996_v10, %v999_v2  ;;  %v1047_v8 = vmul.f32 %v1229_v39, %v1926_v34  ;;  %v1048_v21 = vmul.f32 8.0, %v1028_v62 }
  0xce   :  { %v898_v51 = vsel %vm887_vm4, nan, %v897_v6  ;;  %v1001_v14 = vsel %vm887_vm4, nan, %v1000_v33  ;;  %v1030_v40 = vsub.f32 %v1027_v18, %v1029_v24  ;;  %v1040_v58 = vsub.f32 %v1039_v61, %v1029_v24 }
  0xcf   :  { %v1021_v1 = vmul.f32 %v1001_v14, %v1843_v54  ;;  %v1022_v44 = vmul.f32 %v898_v51, %v1843_v54  ;;  %v1024_v3 = vmul.f32 %v1001_v14, %v794_v25  ;;  %v1025_v12 = vmul.f32 %v898_v51, %v794_v25 }
  0xd0   :  { %v1026_v52 = vsub.f32 0.0, %v898_v51  ;;  %v1031_v42 = vadd.f32 1e-06, %v1030_v40  ;;  %v1041_v63 = vmul.f32 6.2831855, %v1040_v58  ;;  %v1049_v36 = vsub.f32 2.0, %v1048_v21 }
  0xd1   :  { %v1053_v4 = vmul.f32 16.0, %v1028_v62  ;;  %v1060_v35 = vadd.f32 1e-06, %v1928_v59  ;;  %v1069_v0 = vmul.f32 %v1021_v1, %v1911_v48  ;;  %v1071_v45 = vmul.f32 %v1022_v44, %v1915_v9 }
  0xd2   :  { %1281 = vlog2.f32 %v1031_v42  ;;  %v1042_v49 = vmax.f32 %v1041_v63, 0.0  ;;  %v1050_v11 = vadd.f32 %v1049_v36, %v1047_v8  ;;  %v1074_v56 = vmul.f32 %v1024_v3, %v1911_v48 }
  0xd3   :  { %1283 = vrcp.f32 %v1031_v42  ;;  %v1054_v54 = vadd.f32 %v1053_v4, %v1052_v31  ;;  %v1061_v15 = vmul.f32 4.0, %v1060_v35  ;;  %v1070_v7 = vadd.f32 %v1069_v0, %v1068_v20 }
  0xd4   :  { %v1043_v23 = vadd.f32 1e-06, %v1042_v49  ;;  %v1051_v29 = vmul.f32 %v1050_v11, %v1027_v18  ;;  %v1075_v25 = vadd.f32 %v1074_v56, %v1073_v53  ;;  %v1076_v28 = vmul.f32 %v1025_v12, %v1915_v9 }
  0xd5   :  { %v1055_v16 = vadd.f32 4.0, %v1054_v54  ;;  %v1072_v50 = vadd.f32 %v1071_v45, %v1070_v7  ;;  %v1078_v13 = vmul.f32 %v1026_v52, %v1911_v48  ;;  %v1079_v27 = vmul.f32 %v1001_v14, %v1915_v9 }
  0xd6   :  { %v1044_v30 = vmul.f32 0.15915494, %v1043_v23  ;;  %v1077_v2 = vadd.f32 %v1076_v28, %v1075_v25  ;;  %v1082_v39 = vmul.f32 %v1021_v1, %v1918_v37  ;;  %v1084_v32 = vmul.f32 %v1022_v44, %v1920_v60 }
  0xd7   :  { %v1056_v31 = vmul.f32 %v1055_v16, %v1028_v62  ;;  %v1080_v10 = vadd.f32 %v1079_v27, %v1078_v13  ;;  %v1087_v20 = vmul.f32 %v1024_v3, %v1918_v37  ;;  %v1089_v53 = vmul.f32 %v1025_v12, %v1920_v60 }
  0xd8   :  { %v1083_v18 = vadd.f32 %v1082_v39, %v1081_v41  ;;  %v1091_v24 = vmul.f32 %v1026_v52, %v1918_v37  ;;  %v1092_v61 = vmul.f32 %v1001_v14, %v1920_v60  ;;  %v1094_v48 = vmul.f32 %v1021_v1, %v1922_v55 }
  0xd9   :  { %v1057_v9 = vadd.f32 %v1056_v31, %v1051_v29  ;;  %v1088_v6 = vadd.f32 %v1087_v20, %v1086_v57  ;;  %v1095_v33 = vmul.f32 %v1022_v44, %v1903_v26  ;;  %v1097_v8 = vmul.f32 %v1024_v3, %v1922_v55 }
  0xda   :  { %v1085_v21 = vadd.f32 %v1084_v32, %v1083_v18  ;;  %v1975_v62 = vadd.f32 %v1092_v61, %v1091_v24  ;;  %v1098_v51 = vmul.f32 %v1025_v12, %v1903_v26  ;;  %v1100_v40 = vmul.f32 %v1026_v52, %v1922_v55 }
  0xdb   :  { %v1090_v41 = vadd.f32 %v1089_v53, %v1088_v6  ;;  %v1096_v58 = vadd.f32 %v1095_v33, %v1094_v48  ;;  %v1101_v37 = vmul.f32 %v1001_v14, %v1903_v26  ;;  %v1103_v60 = vmul.f32 %v1072_v50, %v1926_v34 }
  0xdc   :  { %v1282_v1 = vpop.eup %1281  ;;  %v1099_v42 = vadd.f32 %v1098_v51, %v1097_v8  ;;  %v1110_v57 = vmul.f32 %v1080_v10, %v1839_v46  ;;  %v1112_v44 = vmul.f32 %v1975_v62, %v1931_v17  ;;  %v1118_v3 = vmul.f32 %v1077_v2, %v1839_v46 }
  0xdd   :  { %v1284_v63 = vpop.eup %1283  ;;  %v1033_v36 = vmul.f32 0.6931472, %v1282_v1  ;;  %v1102_v12 = vadd.f32 %v1101_v37, %v1100_v40  ;;  %v1104_v55 = vsub.f32 %v1760_v43, %v1103_v60  ;;  %v1120_v52 = vmul.f32 %v1090_v41, %v1931_v17 }
  0xde   :  { %v1045_v4 = vmul.f32 %v1284_v63, %v1044_v30  ;;  %v1058_v26 = vmul.f32 %v1284_v63, %v1057_v9  ;;  %v1062_v14 = vmul.f32 %v1284_v63, %v1061_v15  ;;  %v1111_v35 = vmul.f32 %v1110_v57, %v1080_v10 }
  0xdf   :  { %v1035_v0 = vmul.f32 0.5, %v1033_v36  ;;  %v1105_v45 = vmul.f32 %v1104_v55, %v1839_v46  ;;  %v1113_v49 = vmul.f32 %v1112_v44, %v1975_v62  ;;  %v1115_v11 = vmul.f32 %v1102_v12, %v1934_v47 }
  0xe0   :  { %v1059_v56 = vmul.f32 %v1284_v63, %v1058_v26  ;;  %v1119_v54 = vmul.f32 %v1118_v3, %v1077_v2  ;;  %v1121_v7 = vmul.f32 %v1120_v52, %v1090_v41  ;;  %v1123_v23 = vmul.f32 %v1099_v42, %v1934_v47 }
  0xe1   :  { %v1036_v29 = vsub.f32 %v1941_v22, %v1035_v0  ;;  %v1114_v25 = vadd.f32 %v1113_v49, %v1111_v35  ;;  %v1116_v17 = vmul.f32 %v1115_v11, %v1102_v12  ;;  %v1130_v28 = vmul.f32 %v1072_v50, %v1760_v43 }
  0xe2   :  { %v1063_v15 = vsub.f32 1.0, %v1059_v56  ;;  %v1122_v16 = vadd.f32 %v1121_v7, %v1119_v54  ;;  %v1124_v13 = vmul.f32 %v1123_v23, %v1099_v42  ;;  %v1135_v46 = vmul.f32 %v1062_v14, %v1928_v59 }
  0xe3   :  { %v1106_v27 = vsub.f32 %v1036_v29, %v1855_v5  ;;  %v1117_v30 = vadd.f32 %v1116_v17, %v1114_v25  ;;  %v1131_v39 = vsub.f32 %v1926_v34, %v1130_v28  ;;  %v1133_v2 = vsub.f32 %v1855_v5, %v1036_v29 }
  0xe4   :  { %v1064_v32 = vadd.f32 %v1063_v15, %v1062_v14  ;;  %v1066_v47 = vsub.f32 %v1063_v15, %v1062_v14  ;;  %v1125_v31 = vadd.f32 %v1124_v13, %v1122_v16  ;;  %v1137_v22 = vmul.f32 %v1096_v58, %v1045_v4 }
  0xe5   :  { %v1107_v10 = vadd.f32 %v1106_v27, %v1105_v45  ;;  %v1132_v20 = vmul.f32 %v1131_v39, %v1045_v4  ;;  %v1145_v53 = vmul.f32 %v1085_v21, %v1045_v4 }
  0xe6   :  { %v1065_v43 = vmul.f32 0.5, %v1064_v32  ;;  %v1067_v50 = vmul.f32 0.5, %v1066_v47  ;;  %v1126_v18 = vsub.f32 %v1117_v30, %v1125_v31  ;;  %v1138_v48 = vmul.f32 %v1137_v22, %v1096_v58 }
  0xe7   :  { %v1109_v24 = vadd.f32 %v1858_v38, %v1107_v10  ;;  %v1134_v61 = vadd.f32 %v1133_v2, %v1132_v20  ;;  %v1146_v9 = vmul.f32 %v1145_v53, %v1085_v21 }
  0xe8   :  { %v1127_v6 = vmul.f32 %v1126_v18, %v1928_v59  ;;  %v1139_v34 = vmul.f32 %v1099_v42, %v1065_v43  ;;  %v1142_v33 = vmul.f32 %v1102_v12, %v1067_v50  ;;  %v1147_v5 = vmul.f32 %v1090_v41, %v1065_v43 }
  0xe9   :  { %v1136_v8 = vadd.f32 %v1135_v46, %v1134_v61  ;;  %v1150_v51 = vmul.f32 %v1975_v62, %v1067_v50 }
  0xea   :  { %v1128_v40 = vadd.f32 %v1127_v6, %v1109_v24  ;;  %v1140_v37 = vmul.f32 %v1139_v34, %v1099_v42  ;;  %v1143_v60 = vmul.f32 %v1142_v33, %v1102_v12  ;;  %v1148_v1 = vmul.f32 %v1147_v5, %v1090_v41 }
  0xeb   :  { %v1151_v57 = vmul.f32 %v1150_v51, %v1975_v62 }
  0xec   :  { %v1141_v44 = vadd.f32 %v1140_v37, %v1138_v48  ;;  %v1149_v3 = vadd.f32 %v1148_v1, %v1146_v9  ;;  %v1129_v59 = vmax.f32 %v1128_v40, 0.0 }
  0xee   :  { %v1144_v38 = vadd.f32 %v1143_v60, %v1141_v44  ;;  %v1152_v63 = vadd.f32 %v1151_v57, %v1149_v3 }
  0xf0   :  { %v1153_v58 = vsub.f32 %v1144_v38, %v1152_v63 }
  0xf2   :  { %v1154_v21 = vmul.f32 %v1153_v58, %v1762_v19 }
  0xf4   :  { %v1155_v36 = vadd.f32 %v1154_v21, %v1136_v8 }
  0xf6   :  { %v1156_v55 = vmax.f32 %v1155_v36, 0.0 }
  0xf8   :  { %v1157_v52 = vadd.f32 %v1156_v55, %v1129_v59 }
  0xfa   :  { %v1158_v4 = vmul.f32 0.5, %v1157_v52 }
  0xfc   :  { %1285 = vrsqrt.f32 %v1158_v4  ;;  %vm1161_vm13 = vcmp.eq.f32.partialorder %v1158_v4, inf  ;;  %v1164_v42 = vand.u32 2147483648, %v1158_v4  ;;  %vm1163_vm11 = vcmp.eq.f32.partialorder %v1158_v4, 0.0 }
 0x106   :  { %v1286_v26 = vpop.eup %1285 }
 0x107   :  { %v1160_v12 = vmul.f32 %v1286_v26, %v1158_v4 }
 0x109   :  { %v1162_v41 = vsel %vm1161_vm13, %v1158_v4, %v1160_v12 }
 0x10a   :  { %v1165_v62 = vsel %vm1163_vm11, %v1164_v42, %v1162_v41 }
 0x10b   :  { %v1166_v14 = vadd.f32 1.0, %v1165_v62 }
 0x10d   :  { %1287 = vrcp.f32 %v1166_v14 }
 0x117   :  { %v1288_v35 = vpop.eup %1287 }
 0x118   :  { %v1168_v0 = vsub.f32 1.0, %v1288_v35 }
 0x11a   :  { %1169 = vst [vmem:[#allocation7] sm:$0xff] %v1168_v0 }
 0x11b   :  { %1344 = shalt.err (!%p1341_p6)
}
 0x11c   :  { %s1345_s10 = scalar_lea.hbm %s2016_s2, 128 }
 0x11d   :  { %p1346_p7 = scmp.ne.s32.totalorder %s2016_s2, %s1345_s10  ;;  %p1349_p8 = scmp.lt.u32.totalorder %s1345_s10, %s2016_s2 }
 0x11f   :  { %p1351_p9 = pnand %p1349_p8, %p1346_p7 }
 0x121   :  { %1354 = shalt.err (!%p1351_p9)
}
 0x122   :  { %1179 = dma.vmem_to_hbm [thread:$0]  %s1177_s6, 128, %s2016_s2, [#allocation4]  }
 0x123   :  { %1359 = dma.done.wait [#allocation4], 128  }
 0x124   :  { %1360 = vsyncadd [#allocation4], 4294967168 }
 0x125   :  { %1183 = vsyncpa [#allocation3], 1 }
 0x126   :  { %1184 = vsyncpa [#allocation6], 1 }
 0x127   :  { %1185 = vsyncpa [#allocation4], 1 }

</bundles_post_ra>
